<compile_context>
chip_gen: v7x
topology: tpu7x:2x2x1
jax: 0.10.0
libtpu: 0.0.40
codegen_flags: <defaults>
</compile_context>

<pallas_src>
import functools

import jax
import jax.numpy as jnp
from jax import lax
from jax.experimental import pallas as pl
from jax.experimental.pallas import tpu as pltpu


def _round_up(x, m):
    return ((x + m - 1) // m) * m


def _l2_normalize(x, eps=1e-12):
    x = x.astype(jnp.float32)
    return x * lax.rsqrt(jnp.sum(x * x, axis=-1, keepdims=True) + eps)


_DEFAULT_VMEM_CAP = 64 * 1024 * 1024  # conservative (v7x per-TC VMEM)


def _vmem_capacity_bytes():
    try:
        return int(pltpu.get_tpu_info().vmem_capacity_bytes)
    except Exception:
        return _DEFAULT_VMEM_CAP


# -----------------------------------------------------------------------------
# Shared per-tile MultiSimilarity math.
# -----------------------------------------------------------------------------
def _pair_terms(s, la, lb, row, col, m_valid, alpha, beta, base):
    """s: (tm, tn) f32 similarities -> per-anchor pos/neg exp row-sums."""
    same_label = la == lb                       # (tm, tn)
    valid_col = col < m_valid                   # masks zero-padded columns
    pos_mask = jnp.logical_and(jnp.logical_and(same_label, row != col), valid_col)
    neg_mask = jnp.logical_and(jnp.logical_not(same_label), valid_col)
    d = s - base
    # pos/neg masks are disjoint -> single exp per element; one select+mul.
    arg = jnp.where(pos_mask, -alpha, beta) * d
    e = jnp.exp(arg)
    pos = jnp.sum(jnp.where(pos_mask, e, 0.0), axis=1, keepdims=True)
    neg = jnp.sum(jnp.where(neg_mask, e, 0.0), axis=1, keepdims=True)
    return pos, neg


# -----------------------------------------------------------------------------
# Resident-column kernel: grid = (anchor tiles,) [parallel]; column axis is an
# in-kernel fori_loop over the VMEM-resident column operand (fetched once).
# -----------------------------------------------------------------------------
def _ms_resident_kernel(alpha, beta, base, m_valid,
                        ea_ref, ebt_ref, la_ref, lb_ref, pos_ref, neg_ref):
    tile_m = ea_ref.shape[0]
    n_chunks, _, tile_n = ebt_ref.shape

    ea = ea_ref[...]                            # (tile_m, H) bf16
    la = la_ref[...]                            # (tile_m, 1) int32
    row = (pl.program_id(0) * tile_m
           + lax.broadcasted_iota(jnp.int32, (tile_m, 1), 0))

    def body(c, carry):
        pos_sum, neg_sum = carry
        ebt = ebt_ref[c]                        # (H, tile_n), native (K, N)
        lb = lb_ref[c]                          # (1, tile_n)
        s = lax.dot_general(ea, ebt, (((1,), (0,)), ((), ())),
                            preferred_element_type=jnp.float32)
        col = c * tile_n + lax.broadcasted_iota(jnp.int32, (1, tile_n), 1)
        p, n = _pair_terms(s, la, lb, row, col, m_valid, alpha, beta, base)
        return pos_sum + p, neg_sum + n

    zeros = jnp.zeros((tile_m, 1), jnp.float32)
    pos_sum, neg_sum = lax.fori_loop(0, n_chunks, body, (zeros, zeros))

    # MultiSimilarityLoss (pytorch-metric-learning semantics):
    #   pos_loss_a = (1/alpha) * log(1 + sum_p exp(-alpha*(s_ap - base)))
    #   neg_loss_a = (1/beta)  * log(1 + sum_n exp( beta *(s_an - base)))
    pos_ref[...] = (1.0 / alpha) * jnp.log1p(pos_sum)
    neg_ref[...] = (1.0 / beta) * jnp.log1p(neg_sum)


# -----------------------------------------------------------------------------
# Streamed fallback kernel (very large M): grid = (anchor tiles [parallel],
# column tiles [arbitrary]); VMEM accumulators + pl.when finalize.
# -----------------------------------------------------------------------------
def _ms_streamed_kernel(alpha, beta, base, m_valid,
                        ea_ref, ebt_ref, la_ref, lb_ref, pos_ref, neg_ref,
                        pos_acc, neg_acc):
    tile_m = ea_ref.shape[0]
    tile_n = ebt_ref.shape[2]
    j = pl.program_id(1)

    @pl.when(j == 0)
    def _():
        pos_acc[...] = jnp.zeros_like(pos_acc)
        neg_acc[...] = jnp.zeros_like(neg_acc)

    s = lax.dot_general(ea_ref[...], ebt_ref[0], (((1,), (0,)), ((), ())),
                        preferred_element_type=jnp.float32)
    row = (pl.program_id(0) * tile_m
           + lax.broadcasted_iota(jnp.int32, (tile_m, 1), 0))
    col = j * tile_n + lax.broadcasted_iota(jnp.int32, (1, tile_n), 1)
    p, n = _pair_terms(s, la_ref[...], lb_ref[0], row, col, m_valid,
                       alpha, beta, base)
    pos_acc[...] += p
    neg_acc[...] += n

    @pl.when(j == pl.num_programs(1) - 1)
    def _():
        pos_ref[...] = (1.0 / alpha) * jnp.log1p(pos_acc[...])
        neg_ref[...] = (1.0 / beta) * jnp.log1p(neg_acc[...])


def multi_similarity_loss(embed_norm, labels, *, alpha=2.0, beta=50.0,
                          base=0.5, matmul_dtype=jnp.bfloat16):
    """SapBERT ms_loss over cosine similarities.

    embed_norm: (M, H) row-L2-normalized embeddings (any float dtype).
    labels:     (M,) integer labels.
    """
    M, H = embed_norm.shape

    # Pad rows to a multiple of 512 (column chunks always 512-wide; padded
    # columns are masked by valid_col) and features to a multiple of 128
    # (zero-padding normalized rows doesn't change the dot products).
    m_pad = _round_up(max(M, 512), 512)
    h_pad = _round_up(H, 128)
    tile_n = 512
    n_chunks = m_pad // tile_n

    emb = embed_norm.astype(matmul_dtype)
    labels = labels.astype(jnp.int32)
    emb = jnp.pad(emb, ((0, m_pad - M), (0, h_pad - H)))
    labels = jnp.pad(labels, (0, m_pad - M), constant_values=-1)

    # Column operand pre-arranged once into chunked, transposed (K, N) layout:
    # ebt[c, :, t] = emb[c*tile_n + t, :]  -> no per-step RHS transpose.
    ebt = jnp.transpose(emb.reshape(n_chunks, tile_n, h_pad), (0, 2, 1))
    la = labels.reshape(m_pad, 1)
    lb = labels.reshape(n_chunks, 1, tile_n)

    itemsize = emb.dtype.itemsize
    vmem_cap = _vmem_capacity_bytes()

    # VMEM budget for the resident path (assume Pallas double-buffers inputs).
    tile_m_res = 256
    resident_bytes = (
        2 * (h_pad * m_pad * itemsize)            # resident column operand
        + 2 * (tile_m_res * h_pad * itemsize)     # anchor tile
        + 2 * (m_pad * 4) + 2 * (tile_m_res * 4)  # labels
        + 4 * (tile_m_res * tile_n * 4)           # sim/exp/mask temporaries
        + (4 << 20))                              # slack
    use_resident = resident_bytes <= int(0.55 * vmem_cap)

    if use_resident:
        tile_m = tile_m_res                       # m_pad >= 512 -> grid i >= 2
        kernel = functools.partial(_ms_resident_kernel, alpha, beta, base, M)
        grid = (m_pad // tile_m,)
        in_specs = [
            pl.BlockSpec((tile_m, h_pad), lambda i: (i, 0)),          # anchors
            pl.BlockSpec((n_chunks, h_pad, tile_n), lambda i: (0, 0, 0)),
            pl.BlockSpec((tile_m, 1), lambda i: (i, 0)),              # a-labels
            pl.BlockSpec((n_chunks, 1, tile_n), lambda i: (0, 0, 0)),  # c-labels
        ]
        out_specs = [pl.BlockSpec((tile_m, 1), lambda i: (i, 0)),
                     pl.BlockSpec((tile_m, 1), lambda i: (i, 0))]
        scratch_shapes = []
        dim_sem = ("parallel",)
        vmem_limit = int(min(vmem_cap,
                             max(resident_bytes + (8 << 20), 32 << 20)))
    else:
        # Streamed fallback: large anchor tiles cut column re-stream 4x.
        tile_m = 512 if m_pad >= 1024 else 256
        kernel = functools.partial(_ms_streamed_kernel, alpha, beta, base, M)
        grid = (m_pad // tile_m, n_chunks)
        in_specs = [
            pl.BlockSpec((tile_m, h_pad), lambda i, j: (i, 0)),
            pl.BlockSpec((1, h_pad, tile_n), lambda i, j: (j, 0, 0)),
            pl.BlockSpec((tile_m, 1), lambda i, j: (i, 0)),
            pl.BlockSpec((1, 1, tile_n), lambda i, j: (j, 0, 0)),
        ]
        out_specs = [pl.BlockSpec((tile_m, 1), lambda i, j: (i, 0)),
                     pl.BlockSpec((tile_m, 1), lambda i, j: (i, 0))]
        scratch_shapes = [pltpu.VMEM((tile_m, 1), jnp.float32),
                          pltpu.VMEM((tile_m, 1), jnp.float32)]
        dim_sem = ("parallel", "arbitrary")
        streamed_bytes = (2 * tile_m * h_pad * itemsize
                          + 2 * h_pad * tile_n * itemsize
                          + 6 * tile_m * tile_n * 4 + (8 << 20))
        vmem_limit = int(min(vmem_cap, max(streamed_bytes, 32 << 20)))

    pos, neg = pl.pallas_call(
        kernel,
        out_shape=(jax.ShapeDtypeStruct((m_pad, 1), jnp.float32),
                   jax.ShapeDtypeStruct((m_pad, 1), jnp.float32)),
        grid_spec=pltpu.PrefetchScalarGridSpec(
            num_scalar_prefetch=0,
            grid=grid,
            in_specs=in_specs,
            out_specs=out_specs,
            scratch_shapes=scratch_shapes,
        ),
        compiler_params=pltpu.CompilerParams(
            dimension_semantics=dim_sem,
            vmem_limit_bytes=vmem_limit),
    )(emb, ebt, la, lb)

    # Drop padded anchor rows before the reduction.
    pos = pos[:M, 0]
    neg = neg[:M, 0]

    # ThresholdReducer(low=0): mean over anchors with loss > 0 (0 if none).
    def _nonzero_mean(x):
        nz = jnp.sum(jnp.where(x > 0.0, 1.0, 0.0))
        return jnp.sum(x) / jnp.maximum(nz, 1.0)

    return _nonzero_mean(pos) + _nonzero_mean(neg)


# -----------------------------------------------------------------------------
# Model wrapper (parameters / configuration glue).
# -----------------------------------------------------------------------------
class HeteroGraphSAGENeighborsSapMetricLearningPallas:
    def __init__(self, bert_hidden_dim, num_graphsage_layers,
                 graphsage_hidden_channels, graph_loss_weight,
                 intermodal_loss_weight, graphsage_dropout_p,
                 sapbert_loss_weight=1.0, modality_distance="sapbert",
                 miner_margin=0.2):
        self.bert_hidden_dim = bert_hidden_dim
        self.graph_loss_weight = graph_loss_weight
        self.sapbert_loss_weight = sapbert_loss_weight
        self.intermodal_loss_weight = intermodal_loss_weight
        self.modality_distance = modality_distance
        self.graphsage_dropout_p = graphsage_dropout_p
        self.miner_margin = miner_margin

        # Deterministic GraphSAGE (SAGEConv) parameters — shapes from __init__.
        # They are NOT used by forward() (forward consumes pre-encoded graph
        # embeddings) but are initialized here for parity with the module.
        key = jax.random.PRNGKey(0)
        self.graphsage_params = []
        in_dim = bert_hidden_dim
        for _ in range(num_graphsage_layers):
            out_dim = graphsage_hidden_channels
            key, k1, k2 = jax.random.split(key, 3)
            lin_l = jax.random.normal(k1, (in_dim, out_dim), jnp.float32) * 0.02
            lin_r = jax.random.normal(k2, (in_dim, out_dim), jnp.float32) * 0.02
            self.graphsage_params.append({"lin_l": lin_l, "lin_r": lin_r})
            in_dim = out_dim

    def forward(self, text_embed_1, text_embed_2, concept_ids,
                graph_embed_1, graph_embed_2, batch_size):
        assert text_embed_1.shape[0] == batch_size

        labels = jnp.concatenate([concept_ids, concept_ids], axis=0)

        # Normalize once per modality; the intermodal input reuses the two
        # already-normalized stacks.
        text_all = _l2_normalize(
            jnp.concatenate([text_embed_1, text_embed_2], axis=0))
        graph_all = _l2_normalize(
            jnp.concatenate([graph_embed_1, graph_embed_2], axis=0))

        text_loss = self.sapbert_loss_weight * multi_similarity_loss(
            text_all, labels)
        graph_loss = self.graph_loss_weight * multi_similarity_loss(
            graph_all, labels)

        if self.modality_distance == "sapbert":
            inter_embed = jnp.concatenate([text_all, graph_all], axis=0)
            inter_labels = jnp.concatenate([labels, labels], axis=0)
            intermodal_loss = (self.intermodal_loss_weight
                               * multi_similarity_loss(inter_embed, inter_labels))
        else:
            intermodal_loss = jnp.float32(0.0)

        return text_loss, graph_loss, intermodal_loss


# -----------------------------------------------------------------------------
# Demo
# -----------------------------------------------------------------------------
if __name__ == "__main__":
    key = jax.random.PRNGKey(0)
    batch_size = 8
    hidden = 32  # bert_hidden_dim

    k1, k2, k3, k4 = jax.random.split(key, 4)
    text_embed_1 = jax.random.normal(k1, (batch_size, hidden), jnp.float32)
    text_embed_2 = jax.random.normal(k2, (batch_size, hidden), jnp.float32)
    graph_embed_1 = jax.random.normal(k3, (batch_size, hidden), jnp.float32)
    graph_embed_2 = jax.random.normal(k4, (batch_size, hidden), jnp.float32)
    concept_ids = jnp.array([0, 1, 2, 3, 0, 1, 2, 3], dtype=jnp.int32)

    model = HeteroGraphSAGENeighborsSapMetricLearningPallas(
        bert_hidden_dim=hidden,
        num_graphsage_layers=2,
        graphsage_hidden_channels=hidden,
        graph_loss_weight=1.0,
        intermodal_loss_weight=1.0,
        graphsage_dropout_p=0.1,
        sapbert_loss_weight=1.0,
        modality_distance="sapbert",
    )

    text_loss, graph_loss, intermodal_loss = model.forward(
        text_embed_1, text_embed_2, concept_ids,
        graph_embed_1, graph_embed_2, batch_size)

    jax.block_until_ready((text_loss, graph_loss, intermodal_loss))
    print("KERNEL_OK")
</pallas_src>

<mosaic_0001>
module attributes {stable_mosaic.version = 11 : i64} {
  func.func @_ms_resident_kernel(%arg0: i32, %arg1: memref<256x128xbf16, #tpu.memory_space<vmem>>, %arg2: memref<1x128x512xbf16, #tpu.memory_space<vmem>>, %arg3: memref<256x1xi32, #tpu.memory_space<vmem>>, %arg4: memref<1x1x512xi32, #tpu.memory_space<vmem>>, %arg5: memref<256x1xf32, #tpu.memory_space<vmem>>, %arg6: memref<256x1xf32, #tpu.memory_space<vmem>>) attributes {dimension_semantics = [#tpu.dimension_semantics<parallel>], iteration_bounds = array<i64: 2>, scalar_prefetch = 0 : i64, scratch_operands = 0 : i64, tpu.core_type = #tpu.core_type<tc>, window_params = [{transform_indices = @transform_0, window_bounds = array<i64: 256, 128>}, {pipeline_mode = #tpu.pipeline_mode<synchronous>, transform_indices = @transform_1, window_bounds = array<i64: 1, 128, 512>}, {transform_indices = @transform_2, window_bounds = array<i64: 256, 1>}, {pipeline_mode = #tpu.pipeline_mode<synchronous>, transform_indices = @transform_3, window_bounds = array<i64: 1, 1, 512>}, {transform_indices = @transform_4, window_bounds = array<i64: 256, 1>}, {transform_indices = @transform_5, window_bounds = array<i64: 256, 1>}]} {
    %c0 = arith.constant 0 : index
    %c0_0 = arith.constant 0 : index
    %0 = vector.load %arg1[%c0, %c0_0] : memref<256x128xbf16, #tpu.memory_space<vmem>>, vector<256x128xbf16>
    %c0_1 = arith.constant 0 : index
    %c0_2 = arith.constant 0 : index
    %1 = vector.load %arg3[%c0_1, %c0_2] : memref<256x1xi32, #tpu.memory_space<vmem>>, vector<256x1xi32>
    %c256_i32 = arith.constant 256 : i32
    %2 = arith.muli %arg0, %c256_i32 : i32
    %3 = tpu.iota {dimensions = array<i32: 0>} : vector<256x1xi32>
    %4 = vector.broadcast %2 : i32 to vector<256x1xi32>
    %5 = arith.addi %4, %3 : vector<256x1xi32>
    %cst = arith.constant 0.000000e+00 : f32
    %6 = vector.broadcast %cst : f32 to vector<256x1xf32>
    %c0_i32 = arith.constant 0 : i32
    %7 = arith.index_cast %c0_i32 : i32 to index
    %c0_3 = arith.constant 0 : index
    %c0_4 = arith.constant 0 : index
    %8 = vector.load %arg2[%7, %c0_3, %c0_4] : memref<1x128x512xbf16, #tpu.memory_space<vmem>>, vector<1x128x512xbf16>
    %9 = vector.shape_cast %8 : vector<1x128x512xbf16> to vector<128x512xbf16>
    %10 = arith.index_cast %c0_i32 : i32 to index
    %c0_5 = arith.constant 0 : index
    %c0_6 = arith.constant 0 : index
    %11 = vector.load %arg4[%10, %c0_5, %c0_6] : memref<1x1x512xi32, #tpu.memory_space<vmem>>, vector<1x1x512xi32>
    %12 = vector.shape_cast %11 : vector<1x1x512xi32> to vector<1x512xi32>
    %cst_7 = arith.constant dense<0.000000e+00> : vector<256x512xf32>
    %13 = tpu.matmul %0, %9, %cst_7 {dimension_numbers = #tpu.dot_dimension_numbers<[1], [0], [0], [1], [0, 0, 1, 1], [], []>} : vector<256x128xbf16>, vector<128x512xbf16>, vector<256x512xf32> -> vector<256x512xf32>
    %c512_i32 = arith.constant 512 : i32
    %14 = arith.muli %c0_i32, %c512_i32 : i32
    %15 = tpu.iota {dimensions = array<i32: 1>} : vector<1x512xi32>
    %16 = vector.broadcast %14 : i32 to vector<1x512xi32>
    %17 = arith.addi %16, %15 : vector<1x512xi32>
    %18 = vector.broadcast %1 : vector<256x1xi32> to vector<256x512xi32>
    %19 = vector.broadcast %12 : vector<1x512xi32> to vector<256x512xi32>
    %20 = arith.cmpi eq, %18, %19 : vector<256x512xi32>
    %c16_i32 = arith.constant 16 : i32
    %21 = vector.broadcast %c16_i32 : i32 to vector<1x512xi32>
    %22 = arith.cmpi slt, %17, %21 : vector<1x512xi32>
    %23 = vector.broadcast %5 : vector<256x1xi32> to vector<256x512xi32>
    %24 = vector.broadcast %17 : vector<1x512xi32> to vector<256x512xi32>
    %25 = arith.cmpi ne, %23, %24 : vector<256x512xi32>
    %26 = arith.andi %20, %25 : vector<256x512xi1>
    %27 = vector.broadcast %22 : vector<1x512xi1> to vector<256x512xi1>
    %28 = arith.andi %26, %27 : vector<256x512xi1>
    %cst_8 = arith.constant dense<true> : vector<256x512xi1>
    %29 = arith.xori %20, %cst_8 : vector<256x512xi1>
    %30 = vector.broadcast %22 : vector<1x512xi1> to vector<256x512xi1>
    %31 = arith.andi %29, %30 : vector<256x512xi1>
    %cst_9 = arith.constant 5.000000e-01 : f32
    %32 = vector.broadcast %cst_9 : f32 to vector<256x512xf32>
    %33 = arith.subf %13, %32 : vector<256x512xf32>
    %cst_10 = arith.constant -2.000000e+00 : f32
    %cst_11 = arith.constant 5.000000e+01 : f32
    %34 = vector.broadcast %cst_10 : f32 to vector<256x512xf32>
    %35 = vector.broadcast %cst_11 : f32 to vector<256x512xf32>
    %36 = arith.select %28, %34, %35 : vector<256x512xi1>, vector<256x512xf32>
    %37 = arith.mulf %36, %33 : vector<256x512xf32>
    %38 = math.exp %37 : vector<256x512xf32>
    %cst_12 = arith.constant 0.000000e+00 : f32
    %39 = vector.broadcast %cst_12 : f32 to vector<256x512xf32>
    %40 = arith.select %28, %38, %39 : vector<256x512xi1>, vector<256x512xf32>
    %cst_13 = arith.constant dense<0.000000e+00> : vector<256xf32>
    %41 = vector.multi_reduction <add>, %40, %cst_13 [1] : vector<256x512xf32> to vector<256xf32>
    %42 = vector.shape_cast %41 : vector<256xf32> to vector<256x1xf32>
    %cst_14 = arith.constant 0.000000e+00 : f32
    %43 = vector.broadcast %cst_14 : f32 to vector<256x512xf32>
    %44 = arith.select %31, %38, %43 : vector<256x512xi1>, vector<256x512xf32>
    %cst_15 = arith.constant dense<0.000000e+00> : vector<256xf32>
    %45 = vector.multi_reduction <add>, %44, %cst_15 [1] : vector<256x512xf32> to vector<256xf32>
    %46 = vector.shape_cast %45 : vector<256xf32> to vector<256x1xf32>
    %47 = arith.addf %6, %42 : vector<256x1xf32>
    %48 = arith.addf %6, %46 : vector<256x1xf32>
    %c1_i32 = arith.constant 1 : i32
    %49 = math.log1p %47 : vector<256x1xf32>
    %cst_16 = arith.constant 5.000000e-01 : f32
    %50 = vector.broadcast %cst_16 : f32 to vector<256x1xf32>
    %51 = arith.mulf %50, %49 : vector<256x1xf32>
    %c0_17 = arith.constant 0 : index
    %c0_18 = arith.constant 0 : index
    %52 = vector.load %arg5[%c0_17, %c0_18] : memref<256x1xf32, #tpu.memory_space<vmem>>, vector<256x1xf32>
    tpu.vector_store %arg5[%c0_17, %c0_18], %51 {strides = array<i32>} : memref<256x1xf32, #tpu.memory_space<vmem>>, vector<256x1xf32>,
    %53 = math.log1p %48 : vector<256x1xf32>
    %cst_19 = arith.constant 2.000000e-02 : f32
    %54 = vector.broadcast %cst_19 : f32 to vector<256x1xf32>
    %55 = arith.mulf %54, %53 : vector<256x1xf32>
    %c0_20 = arith.constant 0 : index
    %c0_21 = arith.constant 0 : index
    %56 = vector.load %arg6[%c0_20, %c0_21] : memref<256x1xf32, #tpu.memory_space<vmem>>, vector<256x1xf32>
    tpu.vector_store %arg6[%c0_20, %c0_21], %55 {strides = array<i32>} : memref<256x1xf32, #tpu.memory_space<vmem>>, vector<256x1xf32>,
    return
  }
  func.func @transform_0(%arg0: i32) -> (i32, i32) {
    %c0_i32 = arith.constant 0 : i32
    %c0_i32_0 = arith.constant 0 : i32
    return %arg0, %c0_i32 : i32, i32
  }
  func.func @transform_1(%arg0: i32) -> (i32, i32, i32) {
    %c0_i32 = arith.constant 0 : i32
    %c0_i32_0 = arith.constant 0 : i32
    %c0_i32_1 = arith.constant 0 : i32
    %c0_i32_2 = arith.constant 0 : i32
    return %c0_i32, %c0_i32_0, %c0_i32_1 : i32, i32, i32
  }
  func.func @transform_2(%arg0: i32) -> (i32, i32) {
    %c0_i32 = arith.constant 0 : i32
    %c0_i32_0 = arith.constant 0 : i32
    return %arg0, %c0_i32 : i32, i32
  }
  func.func @transform_3(%arg0: i32) -> (i32, i32, i32) {
    %c0_i32 = arith.constant 0 : i32
    %c0_i32_0 = arith.constant 0 : i32
    %c0_i32_1 = arith.constant 0 : i32
    %c0_i32_2 = arith.constant 0 : i32
    return %c0_i32, %c0_i32_0, %c0_i32_1 : i32, i32, i32
  }
  func.func @transform_4(%arg0: i32) -> (i32, i32) {
    %c0_i32 = arith.constant 0 : i32
    %c0_i32_0 = arith.constant 0 : i32
    return %arg0, %c0_i32 : i32, i32
  }
  func.func @transform_5(%arg0: i32) -> (i32, i32) {
    %c0_i32 = arith.constant 0 : i32
    %c0_i32_0 = arith.constant 0 : i32
    return %arg0, %c0_i32 : i32, i32
  }
}

</mosaic_0001>

<bundles_post_ra>
// kernel: tpu_custom_call.1
= control target key start
LH: loop header
LB: loop body
LE: loop exit
PB: predicated region body
PF: predicated region fallthrough
CT: control target
= control target key end

     0   :  { %s4557_s18 = smov 0   ;;  %s6890_s0 = inlined_call_operand.vmem [shape: bf16[512,128], index: 0, kind: input, shape index: {}]   ;;  %s6891_s1 = inlined_call_operand.vmem [shape: bf16[1,128,512], index: 1, kind: input, shape index: {}]   ;;  %s6892_s2 = inlined_call_operand.vmem [shape: s32[512,1], index: 2, kind: input, shape index: {}]   ;;  %s6893_s3 = inlined_call_operand.vmem [shape: s32[1,1,512], index: 3, kind: input, shape index: {}]   ;;  %s6894_s4 = inlined_call_operand.vmem [shape: f32[512,1], index: 4, kind: output, shape index: {0}]   ;;  %s6895_s5 = inlined_call_operand.vmem [shape: f32[512,1], index: 5, kind: output, shape index: {1}]  }
   0x1 LB: > { %s4055_s19 = sadd.s32 4294967295, %s4522_s18   ;;  %p4059_p0 = scmp.ge.s32.totalorder %s4522_s18, 1  ;;  %s4522_s18 = sphi %s4557_s18, %s16_s18  }
   0x2   : > { %p202_p1 = scmp.lt.s32.totalorder %s4522_s18, 3 }
   0x4   : > { %p203_p2 = pnand %p4059_p0, %p202_p1 }
   0x6   : > { %206 = sbr.rel (%p203_p2) target bundleno = 594 (0x252), region = 36 }
   0xd   : > { %v4260_v0 = vld [vmem:[%s6891_s1 + $0x4] ss:$16 sps:$4 sm:$0xff]   ;;  %s4060_s22 = sshll.u32 %s4055_s19, 5  ;;  %v4262_v1 = vld [vmem:[%s6891_s1] ss:$16 sps:$4 sm:$0xff]   ;;  %v4524_v2 = vmov 0  }
   0xe   : > { %717 = vmatprep.mubr.bf16.mxu0 %v4524_v2  ;;  %p241_p3 = scmp.lt.s32.totalorder %s4060_s22, 63  ;;  %4258 = vset.pattern.permute.xlu0 %v4524_v2  ;;  %v4263_v3 = vld [vmem:[%s6891_s1 + $0x24] ss:$16 sps:$4 sm:$0xff]   ;;  %v4265_v4 = vld [vmem:[%s6891_s1 + $0x20] ss:$16 sps:$4 sm:$0xff]   ;;  %vm6912_vm1 = vmmov 1  }
   0xf   : > { %685 = vmatprep.subr.bf16.mxu0 %v4260_v0  ;;  %4259 = vset.pattern.permute.xlu1 %v4524_v2  ;;  %v4266_v5 = vld [vmem:[%s6891_s1 + $0x44] ss:$16 sps:$4 sm:$0xff]   ;;  %v4268_v6 = vld [vmem:[%s6891_s1 + $0x40] ss:$16 sps:$4 sm:$0xff]   ;;  %v4300_v34 = vld [vmem:[%s6891_s1 + $0xc] ss:$16 sps:$4 sm:$0xff]  }
  0x10   : > { %686 = vmatpush1.bf16.msra.mxu0 %v4262_v1  ;;  %s7356_s22 = smov (!%p241_p3, %s4060_s22), 63  ;;  %910 = vmatprep.mubr.bf16.mxu1 %v4524_v2  ;;  %v4269_v7 = vld [vmem:[%s6891_s1 + $0x64] ss:$16 sps:$4 sm:$0xff]   ;;  %v4271_v8 = vld [vmem:[%s6891_s1 + $0x60] ss:$16 sps:$4 sm:$0xff]   ;;  %s4068_s30 = sshll.u32 %s4055_s19, 8 }
  0x11   : > { %687 = vmatprep.subr.bf16.mxu0 %v4263_v3  ;;  %s4061_s6 = sshll.u32 %s7356_s22, 2  ;;  %s4589_s9 = sshll.u32 %s7356_s22, 3  ;;  %v4272_v9 = vld [vmem:[%s6891_s1 + $0x84] ss:$16 sps:$4 sm:$0xff]   ;;  %v4274_v11 = vld [vmem:[%s6891_s1 + $0x80] ss:$16 sps:$4 sm:$0xff]   ;;  %878 = vmatprep.subr.bf16.mxu1 %v4300_v34 }
  0x12   : > { %s4597_s14 = scalar_lea.vmem %s6890_s0, %s4061_s6  ;;  %s4603_s17 = scalar_lea.vmem %s6892_s2, %s4589_s9  ;;  %v4275_v14 = vld [vmem:[%s6891_s1 + $0xa4] ss:$16 sps:$4 sm:$0xff]   ;;  %v4277_v16 = vld [vmem:[%s6891_s1 + $0xa0] ss:$16 sps:$4 sm:$0xff]   ;;  %v4302_v35 = vld [vmem:[%s6891_s1 + $0x8] ss:$16 sps:$4 sm:$0xff]  }
  0x13   : > { %v297_v10 = vld [vmem:[%s4603_s17] sm:$0xff]  ;;  %v298_v12 = vld [vmem:[%s4603_s17 + $0x8] sm:$0xff]  ;;  %v299_v13 = vld [vmem:[%s4603_s17 + $0x10] sm:$0xff]  ;;  %879 = vmatpush1.bf16.msra.mxu1 %v4302_v35  ;;  %s6144_s7 = scalar_lea.vmem %s6895_s5, %s4589_s9  ;;  %s6158_s11 = scalar_lea.vmem %s6894_s4, %s4589_s9 }
  0x14   : > { %688 = vmatpush1.bf16.msra.mxu0 %v4265_v4  ;;  %1077 = vperm.xlu0 %4258, %v297_v10   ;;  %v300_v15 = vld [vmem:[%s4603_s17 + $0x18] sm:$0xff]  ;;  %v301_v17 = vld [vmem:[%s4603_s17 + $0x20] sm:$0xff]  ;;  %v302_v19 = vld [vmem:[%s4603_s17 + $0x28] sm:$0xff] }
  0x15   : > { %689 = vmatprep.subr.bf16.mxu0 %v4266_v5  ;;  %1083 = vperm.xlu1 %4259, %v299_v13   ;;  %v4278_v18 = vld [vmem:[%s6891_s1 + $0xc4] ss:$16 sps:$4 sm:$0xff]   ;;  %v4280_v20 = vld [vmem:[%s6891_s1 + $0xc0] ss:$16 sps:$4 sm:$0xff]   ;;  %v304_v23 = vld [vmem:[%s4603_s17 + $0x38] sm:$0xff] }
  0x16   : > { %v303_v21 = vld [vmem:[%s4603_s17 + $0x30] sm:$0xff]  ;;  %v305_v25 = vld [vmem:[%s4603_s17 + $0x40] sm:$0xff]  ;;  %v306_v26 = vld [vmem:[%s4603_s17 + $0x48] sm:$0xff] }
  0x17   : > { %v4281_v22 = vld [vmem:[%s6891_s1 + $0xe4] ss:$16 sps:$4 sm:$0xff]   ;;  %v4283_v24 = vld [vmem:[%s6891_s1 + $0xe0] ss:$16 sps:$4 sm:$0xff]   ;;  %v308_v29 = vld [vmem:[%s4603_s17 + $0x58] sm:$0xff] }
  0x18   : > { %690 = vmatpush1.bf16.msra.mxu0 %v4268_v6  ;;  %1080 = vperm.xlu0 %4258, %v298_v12   ;;  %v4643_v27 = vld [vmem:[%s4597_s14] sm:$0xff]   ;;  %v307_v28 = vld [vmem:[%s4603_s17 + $0x50] sm:$0xff]  ;;  %v4651_v31 = vld [vmem:[%s4597_s14 + $0x8] sm:$0xff]  }
  0x19   : > { %691 = vmatprep.subr.bf16.mxu0 %v4269_v7  ;;  %1086 = vperm.xlu1 %4259, %v300_v15   ;;  %v309_v30 = vld [vmem:[%s4603_s17 + $0x60] sm:$0xff]  ;;  %v310_v32 = vld [vmem:[%s4603_s17 + $0x68] sm:$0xff]  ;;  %v311_v33 = vld [vmem:[%s4603_s17 + $0x70] sm:$0xff] }
  0x1a   : > { %v4303_v36 = vld [vmem:[%s6891_s1 + $0x2c] ss:$16 sps:$4 sm:$0xff]   ;;  %v4305_v38 = vld [vmem:[%s6891_s1 + $0x28] ss:$16 sps:$4 sm:$0xff]   ;;  %v313_v40 = vld [vmem:[%s4603_s17 + $0x80] sm:$0xff] }
  0x1b   : > { %v312_v37 = vld [vmem:[%s4603_s17 + $0x78] sm:$0xff]  ;;  %880 = vmatprep.subr.bf16.mxu1 %v4303_v36  ;;  %v314_v41 = vld [vmem:[%s4603_s17 + $0x88] sm:$0xff]  ;;  %v4679_v43 = vld [vmem:[%s4597_s14 + $0x10] sm:$0xff]  }
  0x1c   : > { %692 = vmatpush1.bf16.msra.mxu0 %v4271_v8  ;;  %1089 = vperm.xlu0 %4258, %v301_v17   ;;  %v4306_v39 = vld [vmem:[%s6891_s1 + $0x4c] ss:$16 sps:$4 sm:$0xff]   ;;  %v4308_v42 = vld [vmem:[%s6891_s1 + $0x48] ss:$16 sps:$4 sm:$0xff]   ;;  %v315_v44 = vld [vmem:[%s4603_s17 + $0x90] sm:$0xff] }
  0x1d   : > { %693 = vmatprep.subr.bf16.mxu0 %v4272_v9  ;;  %1092 = vperm.xlu1 %4259, %v302_v19   ;;  %v4309_v45 = vld [vmem:[%s6891_s1 + $0x6c] ss:$16 sps:$4 sm:$0xff]   ;;  %v4311_v47 = vld [vmem:[%s6891_s1 + $0x68] ss:$16 sps:$4 sm:$0xff]   ;;  %v317_v49 = vld [vmem:[%s4603_s17 + $0xa0] sm:$0xff] }
  0x1e   : > { %881 = vmatpush1.bf16.msra.mxu1 %v4305_v38  ;;  %v316_v46 = vld [vmem:[%s4603_s17 + $0x98] sm:$0xff]  ;;  %v318_v50 = vld [vmem:[%s4603_s17 + $0xa8] sm:$0xff]  ;;  %v319_v53 = vld [vmem:[%s4603_s17 + $0xb0] sm:$0xff] }
  0x1f   : > { %882 = vmatprep.subr.bf16.mxu1 %v4306_v39  ;;  %v4312_v48 = vld [vmem:[%s6891_s1 + $0x8c] ss:$16 sps:$4 sm:$0xff]   ;;  %v4314_v51 = vld [vmem:[%s6891_s1 + $0x88] ss:$16 sps:$4 sm:$0xff]   ;;  %v321_v58 = vld [vmem:[%s4603_s17 + $0xc0] sm:$0xff] }
  0x20   : > { %694 = vmatpush1.bf16.msra.mxu0 %v4274_v11  ;;  %1095 = vperm.xlu0 %4258, %v303_v21   ;;  %v4287_v52 = vld [vmem:[%s4597_s14 + $0x18] sm:$0xff]   ;;  %v322_v59 = vld [vmem:[%s4603_s17 + $0xc8] sm:$0xff]  ;;  %v4288_v61 = vld [vmem:[%s4597_s14 + $0x20] sm:$0xff]  }
  0x21   : > { %695 = vmatprep.subr.bf16.mxu0 %v4275_v14  ;;  %1098 = vperm.xlu1 %4259, %v304_v23   ;;  %v4315_v54 = vld [vmem:[%s6891_s1 + $0xac] ss:$16 sps:$4 sm:$0xff]   ;;  %v4317_v56 = vld [vmem:[%s6891_s1 + $0xa8] ss:$16 sps:$4 sm:$0xff]   ;;  %v323_v62 = vld [vmem:[%s4603_s17 + $0xd0] sm:$0xff] }
  0x22   : > { %883 = vmatpush1.bf16.msra.mxu1 %v4308_v42  ;;  %v320_v55 = vld [vmem:[%s4603_s17 + $0xb8] sm:$0xff]  ;;  %v325_v3 = vld [vmem:[%s4603_s17 + $0xe0] sm:$0xff]  ;;  %v326_v4 = vld [vmem:[%s4603_s17 + $0xe8] sm:$0xff] }
  0x23   : > { %884 = vmatprep.subr.bf16.mxu1 %v4309_v45  ;;  %v4318_v57 = vld [vmem:[%s6891_s1 + $0xcc] ss:$16 sps:$4 sm:$0xff]   ;;  %v4320_v60 = vld [vmem:[%s6891_s1 + $0xc8] ss:$16 sps:$4 sm:$0xff]   ;;  %v327_v6 = vld [vmem:[%s4603_s17 + $0xf0] sm:$0xff] }
  0x24   : > { %696 = vmatpush1.bf16.msra.mxu0 %v4277_v16  ;;  %1101 = vperm.xlu0 %4258, %v305_v25   ;;  %v4321_v63 = vld [vmem:[%s6891_s1 + $0xec] ss:$16 sps:$4 sm:$0xff]   ;;  %v4323_v1 = vld [vmem:[%s6891_s1 + $0xe8] ss:$16 sps:$4 sm:$0xff]   ;;  %v4290_v8 = vld [vmem:[%s4597_s14 + $0x30] sm:$0xff]  }
  0x25   : > { %697 = vmatprep.subr.bf16.mxu0 %v4278_v18  ;;  %1104 = vperm.xlu1 %4259, %v306_v26   ;;  %v324_v0 = vld [vmem:[%s4603_s17 + $0xd8] sm:$0xff]  ;;  %v4289_v5 = vld [vmem:[%s4597_s14 + $0x28] sm:$0xff]   ;;  %v4292_v10 = vld [vmem:[%s4597_s14 + $0x40] sm:$0xff]  }
  0x26   : > { %885 = vmatpush1.bf16.msra.mxu1 %v4311_v47  ;;  %v328_v7 = vld [vmem:[%s4603_s17 + $0xf8] sm:$0xff]  ;;  %v4293_v11 = vld [vmem:[%s4597_s14 + $0x48] sm:$0xff]   ;;  %v4294_v12 = vld [vmem:[%s4597_s14 + $0x50] sm:$0xff]  }
  0x27   : > { %886 = vmatprep.subr.bf16.mxu1 %v4312_v48  ;;  %v4291_v9 = vld [vmem:[%s4597_s14 + $0x38] sm:$0xff]   ;;  %v4296_v14 = vld [vmem:[%s4597_s14 + $0x60] sm:$0xff]   ;;  %v4297_v15 = vld [vmem:[%s4597_s14 + $0x68] sm:$0xff]   ;;  %v6944_v48 = vmov 0 }
  0x28   : > { %698 = vmatpush1.bf16.msra.mxu0 %v4280_v20  ;;  %1107 = vperm.xlu0 %4258, %v307_v28   ;;  %v4295_v13 = vld [vmem:[%s4597_s14 + $0x58] sm:$0xff]   ;;  %v4298_v17 = vld [vmem:[%s4597_s14 + $0x70] sm:$0xff]   ;;  %v428_v34 = vld [vmem:[%s6893_s3] sm:$0xf] }
  0x29   : > { %699 = vmatprep.subr.bf16.mxu0 %v4281_v22  ;;  %1110 = vperm.xlu1 %4259, %v308_v29   ;;  %v4299_v22 = vld [vmem:[%s4597_s14 + $0x78] sm:$0xff]  }
  0x2a   : > { %887 = vmatpush1.bf16.msra.mxu1 %v4314_v51 }
  0x2b   : > { %888 = vmatprep.subr.bf16.mxu1 %v4315_v54 }
  0x2c   : > { %700 = vmatpush1.bf16.msra.mxu0 %v4283_v24  ;;  %1113 = vperm.xlu0 %4258, %v309_v30  }
  0x2d   : > { %1116 = vperm.xlu1 %4259, %v310_v32  }
  0x2e   : > { %889 = vmatpush1.bf16.msra.mxu1 %v4317_v56 }
  0x2f   : > { %718 = vmatmul.mubr.bf16.vlgmr.msra.gmra.mrb[0].mxu0 %v4643_v27  ;;  %890 = vmatprep.subr.bf16.mxu1 %v4318_v57  ;;  %v6954_v57 = vmov 0 }
  0x30   : > { %727 = vmatprep.mubr.bf16.mxu0 %v4524_v2  ;;  %1119 = vperm.xlu0 %4258, %v311_v33  }
  0x31   : > { %1122 = vperm.xlu1 %4259, %v312_v37  }
  0x32   : > { %891 = vmatpush1.bf16.msra.mxu1 %v4320_v60 }
  0x33   : > { %892 = vmatprep.subr.bf16.mxu1 %v4321_v63  ;;  %v6961_v63 = vmov 0 }
  0x34   : > { %1125 = vperm.xlu0 %4258, %v313_v40  }
  0x35   : > { %1128 = vperm.xlu1 %4259, %v314_v41   ;;  %v6938_v41 = vmov 0 }
  0x36   : > { %893 = vmatpush1.bf16.msra.mxu1 %v4323_v1  ;;  %v6964_v1 = vmov 0 }
  0x37   : > { %728 = vmatmul.mubr.bf16.gmra.mrb[4].mxu0 %v4651_v31 }
  0x38   : > { %737 = vmatprep.mubr.bf16.mxu0 %v4524_v2  ;;  %1131 = vperm.xlu0 %4258, %v315_v44   ;;  %v6940_v44 = vmov 0 }
  0x39   : > { %1134 = vperm.xlu1 %4259, %v316_v46   ;;  %911 = vmatmul.mubr.bf16.vlgmr.msra.gmra.mrb[0].mxu1 %v4643_v27  ;;  %v330_v27 = vlaneseq  ;;  %v6942_v46 = vmov 0 }
  0x3a   : > { %920 = vmatprep.mubr.bf16.mxu1 %v4524_v2 }
  0x3b   : > { %v4790_v30 = vshrl.u32 %v330_v27, 7 }
  0x3c   : > { %1137 = vperm.xlu0 %4258, %v317_v49  }
  0x3d   : > { %1140 = vperm.xlu1 %4259, %v318_v50   ;;  %v1174_v33 = vsub.s32 0, %v4790_v30  ;;  %v6946_v50 = vmov 0 }
  0x3f   : > { %738 = vmatmul.mubr.bf16.gmra.mrb[8].mxu0 %v4679_v43  ;;  %v4805_v37 = vrot.slane %v428_v34, %v1174_v33 }
  0x40   : > { %747 = vmatprep.mubr.bf16.mxu0 %v4524_v2  ;;  %1143 = vperm.xlu0 %4258, %v319_v53   ;;  %v6950_v53 = vmov 0 }
  0x41   : > { %1146 = vperm.xlu1 %4259, %v320_v55   ;;  %921 = vmatmul.mubr.bf16.gmra.mrb[4].mxu1 %v4651_v31  ;;  %v6952_v55 = vmov 0 }
  0x42   : > { %930 = vmatprep.mubr.bf16.mxu1 %v4524_v2 }
  0x44   : > { %1149 = vperm.xlu0 %4258, %v321_v58  }
  0x45   : > { %1152 = vperm.xlu1 %4259, %v322_v59   ;;  %v6956_v59 = vmov 0 }
  0x47   : > { %748 = vmatmul.mubr.bf16.gmra.mrb[12].mxu0 %v4287_v52 }
  0x48   : > { %757 = vmatprep.mubr.bf16.mxu0 %v4524_v2  ;;  %1155 = vperm.xlu0 %4258, %v323_v62  }
  0x49   : > { %1158 = vperm.xlu1 %4259, %v324_v0   ;;  %931 = vmatmul.mubr.bf16.gmra.mrb[8].mxu1 %v4679_v43 }
  0x4a   : > { %940 = vmatprep.mubr.bf16.mxu1 %v4524_v2 }
  0x4c   : > { %1161 = vperm.xlu0 %4258, %v325_v3  }
  0x4d   : > { %1164 = vperm.xlu1 %4259, %v326_v4   ;;  %v6968_v4 = vmov 0 }
  0x4f   : > { %758 = vmatmul.mubr.bf16.gmra.mrb[16].mxu0 %v4288_v61 }
  0x50   : > { %767 = vmatprep.mubr.bf16.mxu0 %v4524_v2  ;;  %1167 = vperm.xlu0 %4258, %v327_v6   ;;  %v6974_v6 = vmov 0 }
  0x51   : > { %1170 = vperm.xlu1 %4259, %v328_v7   ;;  %941 = vmatmul.mubr.bf16.gmra.mrb[12].mxu1 %v4287_v52  ;;  %v5005_v7 = vstv %s4068_s30 }
  0x52   : > { %950 = vmatprep.mubr.bf16.mxu1 %v4524_v2 }
  0x57   : > { %768 = vmatmul.mubr.bf16.gmra.mrb[20].mxu0 %v4289_v5 }
  0x58   : > { %777 = vmatprep.mubr.bf16.mxu0 %v4524_v2 }
  0x59   : > { %951 = vmatmul.mubr.bf16.gmra.mrb[16].mxu1 %v4288_v61  ;;  %v6959_v61 = vmov 0 }
  0x5a   : > { %960 = vmatprep.mubr.bf16.mxu1 %v4524_v2 }
  0x5f   : > { %778 = vmatmul.mubr.bf16.gmra.mrb[24].mxu0 %v4290_v8 }
  0x60   : > { %787 = vmatprep.mubr.bf16.mxu0 %v4524_v2 }
  0x61   : > { %961 = vmatmul.mubr.bf16.gmra.mrb[20].mxu1 %v4289_v5  ;;  %v6971_v5 = vmov 0 }
  0x62   : > { %970 = vmatprep.mubr.bf16.mxu1 %v4524_v2 }
  0x67   : > { %788 = vmatmul.mubr.bf16.gmra.mrb[28].mxu0 %v4291_v9 }
  0x68   : > { %797 = vmatprep.mubr.bf16.mxu0 %v4524_v2 }
  0x69   : > { %971 = vmatmul.mubr.bf16.gmra.mrb[24].mxu1 %v4290_v8  ;;  %v364_v8 = vadd.s32 %v5005_v7, %v4790_v30 }
  0x6a   : > { %980 = vmatprep.mubr.bf16.mxu1 %v4524_v2 }
  0x6f   : > { %798 = vmatmul.mubr.bf16.gmra.mrb[32].mxu0 %v4292_v10 }
  0x70   : > { %807 = vmatprep.mubr.bf16.mxu0 %v4524_v2 }
  0x71   : > { %981 = vmatmul.mubr.bf16.gmra.mrb[28].mxu1 %v4291_v9  ;;  %v5010_v9 = vand.u32 127, %v330_v27  ;;  %v6916_v27 = vmov 50.0  }
  0x72   : > { %990 = vmatprep.mubr.bf16.mxu1 %v4524_v2 }
  0x77   : > { %808 = vmatmul.mubr.bf16.gmra.mrb[36].mxu0 %v4293_v11 }
  0x78   : > { %817 = vmatprep.mubr.bf16.mxu0 %v4524_v2 }
  0x79   : > { %991 = vmatmul.mubr.bf16.gmra.mrb[32].mxu1 %v4292_v10  ;;  %v332_v10 = vadd.s32 8, %v4790_v30 }
  0x7a   : > { %1000 = vmatprep.mubr.bf16.mxu1 %v4524_v2 }
  0x7f   : > { %818 = vmatmul.mubr.bf16.gmra.mrb[40].mxu0 %v4294_v12 }
  0x80   : > { %827 = vmatprep.mubr.bf16.mxu0 %v4524_v2 }
  0x81   : > { %1001 = vmatmul.mubr.bf16.gmra.mrb[36].mxu1 %v4293_v11  ;;  %v365_v11 = vadd.s32 %v5005_v7, %v332_v10 }
  0x82   : > { %1010 = vmatprep.mubr.bf16.mxu1 %v4524_v2 }
  0x87   : > { %828 = vmatmul.mubr.bf16.gmra.mrb[44].mxu0 %v4295_v13 }
  0x88   : > { %837 = vmatprep.mubr.bf16.mxu0 %v4524_v2 }
  0x89   : > { %1011 = vmatmul.mubr.bf16.gmra.mrb[40].mxu1 %v4294_v12  ;;  %v333_v12 = vadd.s32 16, %v4790_v30 }
  0x8a   : > { %1020 = vmatprep.mubr.bf16.mxu1 %v4524_v2 }
  0x8f   : > { %838 = vmatmul.mubr.bf16.gmra.mrb[48].mxu0 %v4296_v14 }
  0x90   : > { %847 = vmatprep.mubr.bf16.mxu0 %v4524_v2 }
  0x91   : > { %1021 = vmatmul.mubr.bf16.gmra.mrb[44].mxu1 %v4295_v13  ;;  %v366_v13 = vadd.s32 %v5005_v7, %v333_v12  ;;  %v336_v12 = vadd.s32 40, %v4790_v30 }
  0x92   : > { %1030 = vmatprep.mubr.bf16.mxu1 %v4524_v2 }
  0x93   : > { %v4761_v16 = vpop.permute.xlu0 %1077 }
  0x94   : > { %v4764_v18 = vpop.permute.xlu1 %1083 }
  0x97   : > { %848 = vmatmul.mubr.bf16.gmra.mrb[52].mxu0 %v4297_v15  ;;  %v4766_v19 = vpop.permute.xlu0 %1080 }
  0x98   : > { %857 = vmatprep.mubr.bf16.mxu0 %v4524_v2  ;;  %v4770_v20 = vpop.permute.xlu1 %1086 }
  0x99   : > { %1031 = vmatmul.mubr.bf16.gmra.mrb[48].mxu1 %v4296_v14  ;;  %v334_v14 = vadd.s32 24, %v4790_v30 }
  0x9a   : > { %1040 = vmatprep.mubr.bf16.mxu1 %v4524_v2 }
  0x9b   : > { %v4772_v21 = vpop.permute.xlu0 %1089 }
  0x9c   : > { %v4775_v23 = vpop.permute.xlu1 %1092 }
  0x9f   : > { %858 = vmatmul.mubr.bf16.gmra.mrb[56].mxu0 %v4298_v17  ;;  %v4777_v24 = vpop.permute.xlu0 %1095 }
  0xa0   : > { %867 = vmatprep.mubr.bf16.mxu0 %v4524_v2  ;;  %v4780_v25 = vpop.permute.xlu1 %1098 }
  0xa1   : > { %1041 = vmatmul.mubr.bf16.gmra.mrb[52].mxu1 %v4297_v15 }
  0xa2   : > { %1050 = vmatprep.mubr.bf16.mxu1 %v4524_v2 }
  0xa3   : > { %v4782_v26 = vpop.permute.xlu0 %1101 }
  0xa4   : > { %v4784_v28 = vpop.permute.xlu1 %1104 }
  0xa7   : > { %868 = vmatmul.mubr.bf16.gmra.mrb[60].mxu0 %v4299_v22  ;;  %v4786_v29 = vpop.permute.xlu0 %1107 }
  0xa8   : > { %v4792_v31 = vpop.permute.xlu1 %1110 }
  0xa9   : > { %1051 = vmatmul.mubr.bf16.gmra.mrb[56].mxu1 %v4298_v17  ;;  %v367_v17 = vadd.s32 %v5005_v7, %v334_v14 }
  0xaa   : > { %1060 = vmatprep.mubr.bf16.mxu1 %v4524_v2  ;;  %v6948_v2 = vmov 0 }
  0xab   : > { %v4794_v32 = vpop.permute.xlu0 %1113 }
  0xac   : > { %v4800_v35 = vpop.permute.xlu1 %1116 }
  0xaf   : > { %v4802_v36 = vpop.permute.xlu0 %1119 }
  0xb0   : > { %v4807_v38 = vpop.permute.xlu1 %1122 }
  0xb1   : > { %1061 = vmatmul.mubr.bf16.gmra.mrb[60].mxu1 %v4299_v22 }
  0xb3   : > { %v4809_v39 = vpop.permute.xlu0 %1125 }
  0xb4   : > { %vm6905_vm0 = vcmp.eq.s32.totalorder %v4809_v39, %v4805_v37  ;;  %v4813_v40 = vpop.permute.xlu1 %1128 }
  0xb5   : > { %vm4819_vm2 = vmxor %vm6905_vm0, %vm6912_vm1  ;;  %vm6903_vm4 = vcmp.eq.s32.totalorder %v4813_v40, %v4805_v37 }
  0xb6   : > { %v6939_v41 = vsel %vm4819_vm2, 4294967295, %v6938_v41  ;;  %vm4848_vm7 = vmxor %vm6903_vm4, %vm6912_vm1 }
  0xb7   : > { %v4823_v42 = vpop.permute.xlu0 %1131  ;;  %v6943_v46 = vsel %vm4848_vm7, 4294967295, %v6942_v46  ;;  %vm7004_vm7 = vcmp.eq.s32.totalorder %v4780_v25, %v4805_v37 }
  0xb8   : > { %vm6901_vm3 = vcmp.eq.s32.totalorder %v4823_v42, %v4805_v37  ;;  %v4828_v43 = vpop.permute.xlu1 %1134 }
  0xb9   : > { %vm4836_vm5 = vmxor %vm6901_vm3, %vm6912_vm1  ;;  %vm6899_vm8 = vcmp.eq.s32.totalorder %v4828_v43, %v4805_v37 }
  0xba   : > { %v6941_v44 = vsel %vm4836_vm5, 4294967295, %v6940_v44  ;;  %vm4873_vm11 = vmxor %vm6899_vm8, %vm6912_vm1 }
  0xbb   : > { %v4840_v45 = vpop.permute.xlu0 %1137  ;;  %v6947_v50 = vsel %vm4873_vm11, 4294967295, %v6946_v50 }
  0xbc   : > { %vm6897_vm6 = vcmp.eq.s32.totalorder %v4840_v45, %v4805_v37  ;;  %v4852_v47 = vpop.permute.xlu1 %1140 }
  0xbd   : > { %vm4860_vm9 = vmxor %vm6897_vm6, %vm6912_vm1  ;;  %vm6898_vm12 = vcmp.eq.s32.totalorder %v4852_v47, %v4805_v37 }
  0xbe   : > { %v6945_v48 = vsel %vm4860_vm9, 4294967295, %v6944_v48  ;;  %vm4897_vm15 = vmxor %vm6898_vm12, %vm6912_vm1 }
  0xbf   : > { %v4864_v49 = vpop.permute.xlu0 %1143  ;;  %v6951_v53 = vsel %vm4897_vm15, 4294967295, %v6950_v53 }
  0xc0   : > { %vm6896_vm10 = vcmp.eq.s32.totalorder %v4864_v49, %v4805_v37  ;;  %v4877_v51 = vpop.permute.xlu1 %1146 }
  0xc1   : > { %vm4885_vm13 = vmxor %vm6896_vm10, %vm6912_vm1  ;;  %vm6902_vm10 = vcmp.eq.s32.totalorder %v4877_v51, %v4805_v37 }
  0xc2   : > { %v6949_v2 = vsel %vm4885_vm13, 4294967295, %v6948_v2  ;;  %vm4921_vm8 = vmxor %vm6902_vm10, %vm6912_vm1  ;;  %vm6927_vm13 = vcmp.eq.s32.totalorder %v4775_v23, %v4805_v37 }
  0xc3   : > { %v4889_v52 = vpop.permute.xlu0 %1149  ;;  %v6955_v57 = vsel %vm4921_vm8, 4294967295, %v6954_v57  ;;  %vm6924_vm8 = vcmp.eq.s32.totalorder %v4770_v20, %v4805_v37 }
  0xc4   : > { %vm6900_vm14 = vcmp.eq.s32.totalorder %v4889_v52, %v4805_v37  ;;  %v4901_v54 = vpop.permute.xlu1 %1152 }
  0xc5   : > { %vm4909_vm6 = vmxor %vm6900_vm14, %vm6912_vm1  ;;  %vm6906_vm14 = vcmp.eq.s32.totalorder %v4901_v54, %v4805_v37 }
  0xc6   : > { %v6953_v55 = vsel %vm4909_vm6, 4294967295, %v6952_v55  ;;  %vm4945_vm4 = vmxor %vm6906_vm14, %vm6912_vm1 }
  0xc7   : > { %v4913_v56 = vpop.permute.xlu0 %1155  ;;  %v6960_v61 = vsel %vm4945_vm4, 4294967295, %v6959_v61 }
  0xc8   : > { %vm6904_vm12 = vcmp.eq.s32.totalorder %v4913_v56, %v4805_v37  ;;  %v4925_v58 = vpop.permute.xlu1 %1158 }
  0xc9   : > { %vm4933_vm3 = vmxor %vm6904_vm12, %vm6912_vm1  ;;  %vm6908_vm12 = vcmp.eq.s32.totalorder %v4925_v58, %v4805_v37 }
  0xca   : > { %v6957_v59 = vsel %vm4933_vm3, 4294967295, %v6956_v59  ;;  %vm4969_vm3 = vmxor %vm6908_vm12, %vm6912_vm1 }
  0xcb   : > { %6958 = vst [vmem:[#allocation2_spill] sm:$0xff] %v6957_v59  ;;  %v4937_v60 = vpop.permute.xlu0 %1161  ;;  %v6965_v1 = vsel %vm4969_vm3, 4294967295, %v6964_v1 }
  0xcc   : > { %vm6907_vm10 = vcmp.eq.s32.totalorder %v4937_v60, %v4805_v37  ;;  %v4949_v62 = vpop.permute.xlu1 %1164  ;;  %6966 = vst [vmem:[#allocation4_spill] sm:$0xff] %v6965_v1 }
  0xcd   : > { %vm4957_vm0 = vmxor %vm6907_vm10, %vm6912_vm1  ;;  %vm6911_vm10 = vcmp.eq.s32.totalorder %v4949_v62, %v4805_v37 }
  0xce   : > { %v6962_v63 = vsel %vm4957_vm0, 4294967295, %v6961_v63  ;;  %vm4991_vm12 = vmxor %vm6911_vm10, %vm6912_vm1  ;;  %vm6925_vm10 = vcmp.lt.s32.totalorder %v5010_v9, 16 }
  0xcf   : > { %6963 = vst [vmem:[#allocation3_spill] sm:$0xff] %v6962_v63  ;;  %v4961_v0 = vpop.permute.xlu0 %1167  ;;  %v6972_v5 = vsel %vm4991_vm12, 4294967295, %v6971_v5 }
  0xd0   : > { %vm6909_vm14 = vcmp.eq.s32.totalorder %v4961_v0, %v4805_v37  ;;  %v4973_v3 = vpop.permute.xlu1 %1170  ;;  %6973 = vst [vmem:[#allocation7_spill] sm:$0xff] %v6972_v5 }
  0xd1   : > { %6967 = vst [vmem:[#allocation5_spill] sm:$0xff] %v4973_v3  ;;  %vm4981_vm0 = vmxor %vm6909_vm14, %vm6912_vm1  ;;  %vm6910_vm4 = vcmp.eq.s32.totalorder %v4973_v3, %v4805_v37  ;;  %vm1320_vm14 = vcmp.ne.s32.totalorder %v364_v8, %v5010_v9  ;;  %v335_v8 = vadd.s32 32, %v4790_v30 }
  0xd2   : > { %v6969_v4 = vsel %vm4981_vm0, 4294967295, %v6968_v4  ;;  %vm4999_vm3 = vmxor %vm6910_vm4, %vm6912_vm1  ;;  %vm6914_vm4 = vcmp.eq.s32.totalorder %v4761_v16, %v4805_v37  ;;  %vm6915_vm0 = vcmp.eq.s32.totalorder %v4766_v19, %v4805_v37 }
  0xd3   : > { %6970 = vst [vmem:[#allocation6_spill] sm:$0xff] %v6969_v4  ;;  %v6975_v6 = vsel %vm4999_vm3, 4294967295, %v6974_v6  ;;  %vm1448_vm1 = vmand %vm6914_vm4, %vm1320_vm14  ;;  %vm1324_vm3 = vcmp.ne.s32.totalorder %v365_v11, %v5010_v9  ;;  %vm1328_vm14 = vcmp.ne.s32.totalorder %v366_v13, %v5010_v9  ;;  %vm6923_vm4 = vcmp.eq.s32.totalorder %v4764_v18, %v4805_v37 }
  0xd4   : > { %6976 = vst [vmem:[#allocation8_spill] sm:$0xff] %v6975_v6  ;;  %vm5029_vm12 = vmand %vm1448_vm1, %vm6925_vm10  ;;  %v6981_v4 = vmov 50.0   ;;  %v368_v5 = vadd.s32 %v5005_v7, %v335_v8 }
  0xd5   : > { %vm1452_vm6 = vmand %vm6915_vm0, %vm1324_vm3  ;;  %v2096_v33 = vsel %vm5029_vm12, -2.0, %v6916_v27  ;;  %vm1332_vm0 = vcmp.ne.s32.totalorder %v367_v17, %v5010_v9 }
  0xd6   : > { %vm5045_vm1 = vmand %vm1452_vm6, %vm6925_vm10 }
  0xd7   : > { %vm1456_vm3 = vmand %vm6923_vm4, %vm1328_vm14  ;;  %vm6926_vm4 = vcmp.eq.s32.totalorder %v4772_v21, %v4805_v37 }
  0xd8   : > { %vm5062_vm6 = vmand %vm1456_vm3, %vm6925_vm10  ;;  %vm1336_vm3 = vcmp.ne.s32.totalorder %v368_v5, %v5010_v9 }
  0xd9   : > { %vm1460_vm14 = vmand %vm6924_vm8, %vm1332_vm0  ;;  %v2104_v1 = vsel %vm5062_vm6, -2.0, %v6981_v4 }
  0xda   : > { %vm5080_vm0 = vmand %vm1460_vm14, %vm6925_vm10  ;;  %vm6986_vm14 = vmmov 1   ;;  %vm6987_vm10 = vcmp.eq.s32.totalorder %v4761_v16, %v4805_v37  ;;  %v339_v16 = vadd.s32 64, %v4790_v30 }
  0xdb   : > { %vm1464_vm15 = vmand %vm6926_vm4, %vm1336_vm3  ;;  %vm6988_vm3 = vcmp.lt.s32.totalorder %v5010_v9, 16 }
  0xdc   : > { %vm1712_vm9 = vmxor %vm6987_vm10, %vm6986_vm14 }
  0xdd   : > { %vm5105_vm4 = vmand %vm1464_vm15, %vm6988_vm3 }
  0xde   : > { %vm6991_vm10 = vmmov %vm6988_vm3 }
  0xdf   : > { %vm5112_vm5 = vmand %vm1712_vm9, %vm6991_vm10  ;;  %vm6997_vm9 = vcmp.eq.s32.totalorder %v4766_v19, %v4805_v37  ;;  %v342_v19 = vadd.s32 88, %v4790_v30 }
  0xe0   : > { %vm6994_vm15 = vmmov %vm6988_vm3 }
  0xe1   : > { %vm5129_vm10 = vmxor %vm6997_vm9, %vm6986_vm14 }
 0x102   : > { %v719_v22 = vpop.f32.mrb[0].mxu0 }
 0x103   : > { %v4117_v10 = vadd.f32 -0.5, %v719_v22  ;;  %v721_v11 = vpop.f32.mrb[1].mxu0  ;;  %v2100_v22 = vsel %vm5045_vm1, -2.0, %v6981_v4 }
 0x104   : > { %v723_v13 = vpop.f32.mrb[2].mxu0 }
 0x105   : > { %v2224_v14 = vmul.f32 %v4117_v10, %v2096_v33  ;;  %v4121_v27 = vadd.f32 -0.5, %v723_v13  ;;  %v725_v6 = vpop.f32.mrb[3].mxu0  ;;  %v337_v10 = vadd.s32 48, %v4790_v30 }
 0x106   : > { %v369_v6 = vadd.s32 %v5005_v7, %v336_v12  ;;  %v338_v12 = vadd.s32 56, %v4790_v30 }
 0x107   : > { %v2352_v63 = vmul.f32 1.442695, %v2224_v14  ;;  %v2228_v17 = vmul.f32 %v4121_v27, %v2100_v22 }
 0x108   : > { %vm1340_vm8 = vcmp.ne.s32.totalorder %v369_v6, %v5010_v9  ;;  %v370_v6 = vadd.s32 %v5005_v7, %v337_v10 }
 0x109   : > { %4324 = vpow2.f32 %v2352_v63  ;;  %v2360_v33 = vmul.f32 1.442695, %v2228_v17  ;;  %vm1468_vm11 = vmand %vm6927_vm13, %vm1340_vm8  ;;  %vm1212_vm13 = vcmp.eq.s32.totalorder %v4777_v24, %v4805_v37 }
 0x10a   : > { %v729_v13 = vpop.f32.mrb[4].mxu0  ;;  %vm1344_vm8 = vcmp.ne.s32.totalorder %v370_v6, %v5010_v9  ;;  %vm5121_vm3 = vmand %vm1468_vm11, %vm6994_vm15  ;;  %vm7000_vm11 = vcmp.eq.s32.totalorder %v4764_v18, %v4805_v37 }
 0x10b   : > { %4326 = vpow2.f32 %v2360_v33  ;;  %v4125_v27 = vadd.f32 -0.5, %v729_v13  ;;  %v731_v8 = vpop.f32.mrb[5].mxu0  ;;  %v2108_v33 = vsel %vm5080_vm0, -2.0, %v6981_v4  ;;  %vm5145_vm15 = vmxor %vm7000_vm11, %vm6986_vm14  ;;  %v2116_v18 = vsel %vm5121_vm3, -2.0, %v6981_v4 }
 0x10c   : > { %v733_v14 = vpop.f32.mrb[6].mxu0  ;;  %vm7003_vm11 = vcmp.lt.s32.totalorder %v5010_v9, 16 }
 0x10d   : > { %v2232_v5 = vmul.f32 %v4125_v27, %v2104_v1  ;;  %v4129_v22 = vadd.f32 -0.5, %v733_v14  ;;  %v735_v17 = vpop.f32.mrb[7].mxu0  ;;  %v371_v1 = vadd.s32 %v5005_v7, %v338_v12 }
 0x10f   : > { %v2368_v13 = vmul.f32 1.442695, %v2232_v5  ;;  %v2236_v8 = vmul.f32 %v4129_v22, %v2108_v33  ;;  %vm1348_vm9 = vcmp.ne.s32.totalorder %v371_v1, %v5010_v9  ;;  %v372_v1 = vadd.s32 %v5005_v7, %v339_v16 }
 0x110   : > { %vm5168_vm2 = vmand %vm7004_vm7, %vm1348_vm9 }
 0x111   : > { %4328 = vpow2.f32 %v2368_v13  ;;  %v2376_v27 = vmul.f32 1.442695, %v2236_v8  ;;  %v340_v8 = vadd.s32 72, %v4790_v30  ;;  %vm1352_vm9 = vcmp.ne.s32.totalorder %v372_v1, %v5010_v9 }
 0x112   : > { %v739_v17 = vpop.f32.mrb[8].mxu0 }
 0x113   : > { %v4325_v5 = vpop.eup %4324  ;;  %v4133_v12 = vadd.f32 -0.5, %v739_v17  ;;  %v741_v22 = vpop.f32.mrb[9].mxu0  ;;  %4330 = vpow2.f32 %v2376_v27  ;;  %v373_v16 = vadd.s32 %v5005_v7, %v340_v8 }
 0x114   : > { %v743_v59 = vpop.f32.mrb[10].mxu0  ;;  %v2896_v27 = vsel %vm5112_vm5, %v4325_v5, 0.0  ;;  %v2608_v17 = vsel %vm5029_vm12, %v4325_v5, 0.0  ;;  %v2112_v22 = vsel %vm5105_vm4, -2.0, %v6981_v4  ;;  %vm1472_vm12 = vmand %vm1212_vm13, %vm1344_vm8 }
 0x115   : > { %v4327_v3 = vpop.eup %4326  ;;  %v4137_v15 = vadd.f32 -0.5, %v743_v59  ;;  %3027 = vadd.xlane.f32.xlu1 %v2896_v27  ;;  %2739 = vadd.xlane.f32.xlu0 %v2608_v17  ;;  %v745_v10 = vpop.f32.mrb[11].mxu0  ;;  %v2240_v5 = vmul.f32 %v4133_v12, %v2112_v22  ;;  %vm1844_vm5 = vmand %vm5129_vm10, %vm7003_vm11 }
 0x116   : > { %v2900_v12 = vsel %vm1844_vm5, %v4327_v3, 0.0  ;;  %v2612_v17 = vsel %vm5045_vm1, %v4327_v3, 0.0  ;;  %vm7007_vm8 = vmmov %vm7003_vm11  ;;  %vm6931_vm5 = vcmp.eq.s32.totalorder %v4782_v26, %v4805_v37 }
 0x117   : > { %v2384_v59 = vmul.f32 1.442695, %v2240_v5  ;;  %v2244_v27 = vmul.f32 %v4137_v15, %v2116_v18  ;;  %vm5177_vm10 = vmand %vm1472_vm12, %vm7007_vm8  ;;  %v341_v15 = vadd.s32 80, %v4790_v30 }
 0x118   : > { %vm7010_vm7 = vmmov %vm7007_vm8  ;;  %vm1356_vm8 = vcmp.ne.s32.totalorder %v373_v16, %v5010_v9 }
 0x119   : > { %3032 = vadd.xlane.f32.xlu0 %v2900_v12  ;;  %2744 = vadd.xlane.f32.xlu1 %v2612_v17  ;;  %4332 = vpow2.f32 %v2384_v59  ;;  %v2392_v13 = vmul.f32 1.442695, %v2244_v27  ;;  %vm5186_vm1 = vmand %vm5145_vm15, %vm7010_vm7  ;;  %v2120_v17 = vsel %vm5177_vm10, -2.0, %v6981_v4  ;;  %v374_v16 = vadd.s32 %v5005_v7, %v341_v15 }
 0x11a   : > { %v749_v10 = vpop.f32.mrb[12].mxu0  ;;  %vm7013_vm12 = vmmov %vm7010_vm7  ;;  %vm6930_vm7 = vcmp.eq.s32.totalorder %v4784_v28, %v4805_v37 }
 0x11b   : > { %v4329_v34 = vpop.eup %4328  ;;  %v4141_v8 = vadd.f32 -0.5, %v749_v10  ;;  %v751_v5 = vpop.f32.mrb[13].mxu0  ;;  %4334 = vpow2.f32 %v2392_v13  ;;  %vm5197_vm11 = vmand %vm5168_vm2, %vm7013_vm12  ;;  %vm7016_vm2 = vcmp.eq.s32.totalorder %v4772_v21, %v4805_v37 }
 0x11c   : > { %v753_v59 = vpop.f32.mrb[14].mxu0  ;;  %v2904_v27 = vsel %vm5186_vm1, %v4329_v34, 0.0  ;;  %v2616_v12 = vsel %vm5062_vm6, %v4329_v34, 0.0  ;;  %vm5213_vm15 = vmxor %vm7016_vm2, %vm6986_vm14  ;;  %v2124_v21 = vsel %vm5197_vm11, -2.0, %v6981_v4  ;;  %vm7019_vm1 = vcmp.eq.s32.totalorder %v4770_v20, %v4805_v37 }
 0x11d   : > { %v4331_v13 = vpop.eup %4330  ;;  %v4145_v11 = vadd.f32 -0.5, %v753_v59  ;;  %3037 = vadd.xlane.f32.xlu1 %v2904_v27  ;;  %2749 = vadd.xlane.f32.xlu0 %v2616_v12  ;;  %v755_v10 = vpop.f32.mrb[15].mxu0  ;;  %v2248_v3 = vmul.f32 %v4141_v8, %v2120_v17  ;;  %vm1480_vm6 = vmand %vm6931_vm5, %vm1352_vm9  ;;  %v375_v8 = vadd.s32 %v5005_v7, %v342_v19  ;;  %vm7022_vm9 = vcmp.lt.s32.totalorder %v5010_v9, 16 }
 0x11e   : > { %vm1724_vm12 = vmxor %vm7019_vm1, %vm6986_vm14  ;;  %v2620_v59 = vsel %vm5080_vm0, %v4331_v13, 0.0  ;;  %v343_v27 = vadd.s32 96, %v4790_v30  ;;  %vm1360_vm0 = vcmp.ne.s32.totalorder %v374_v16, %v5010_v9  ;;  %vm6933_vm5 = vcmp.eq.s32.totalorder %v4786_v29, %v4805_v37 }
 0x11f   : > { %v2400_v34 = vmul.f32 1.442695, %v2248_v3  ;;  %v2252_v5 = vmul.f32 %v4145_v11, %v2124_v21  ;;  %vm5236_vm2 = vmand %vm6930_vm7, %vm1356_vm8 }
 0x120   : > { %vm5245_vm1 = vmand %vm1480_vm6, %vm7022_vm9 }
 0x121   : > { %2754 = vadd.xlane.f32.xlu0 %v2620_v59  ;;  %4336 = vpow2.f32 %v2400_v34  ;;  %v2408_v20 = vmul.f32 1.442695, %v2252_v5  ;;  %vm7025_vm8 = vmmov %vm7022_vm9  ;;  %v2128_v1 = vsel %vm5245_vm1, -2.0, %v6981_v4 }
 0x122   : > { %v759_v12 = vpop.f32.mrb[16].mxu0  ;;  %vm5252_vm7 = vmand %vm1724_vm12, %vm7025_vm8 }
 0x123   : > { %v4333_v63 = vpop.eup %4332  ;;  %v4149_v19 = vadd.f32 -0.5, %v759_v12  ;;  %v761_v11 = vpop.f32.mrb[17].mxu0  ;;  %4338 = vpow2.f32 %v2408_v20  ;;  %vm7028_vm6 = vmmov %vm7025_vm8  ;;  %vm1364_vm8 = vcmp.ne.s32.totalorder %v375_v8, %v5010_v9  ;;  %v2908_v34 = vsel %vm5252_vm7, %v4331_v13, 0.0 }
 0x124   : > { %vm5263_vm9 = vmand %vm5236_vm2, %vm7028_vm6  ;;  %v763_v21 = vpop.f32.mrb[18].mxu0  ;;  %v2624_v5 = vsel %vm5105_vm4, %v4333_v63, 0.0  ;;  %vm6932_vm6 = vcmp.eq.s32.totalorder %v4792_v31, %v4805_v37  ;;  %v344_v13 = vadd.s32 104, %v4790_v30  ;;  %v376_v11 = vadd.s32 %v5005_v7, %v343_v27 }
 0x125   : > { %vm5271_vm12 = vmxor %vm1212_vm13, %vm6986_vm14  ;;  %v4335_v59 = vpop.eup %4334  ;;  %vm7033_vm13 = vcmp.eq.s32.totalorder %v4775_v23, %v4805_v37  ;;  %v4153_v14 = vadd.f32 -0.5, %v763_v21  ;;  %3042 = vadd.xlane.f32.xlu0 %v2908_v34  ;;  %2759 = vadd.xlane.f32.xlu1 %v2624_v5  ;;  %v765_v20 = vpop.f32.mrb[19].mxu0  ;;  %v2256_v12 = vmul.f32 %v4149_v19, %v2128_v1  ;;  %v2132_v17 = vsel %vm5263_vm9, -2.0, %v6981_v4 }
 0x126   : > { %vm5287_vm2 = vmxor %vm7033_vm13, %vm6986_vm14  ;;  %vm7038_vm7 = vcmp.lt.s32.totalorder %v5010_v9, 16  ;;  %v2628_v27 = vsel %vm5121_vm3, %v4335_v59, 0.0  ;;  %v912_v5 = vpop.f32.mrb[0].mxu1  ;;  %v377_v1 = vadd.s32 %v5005_v7, %v344_v13 }
 0x127   : > { %vm5299_vm4 = vmand %vm6933_vm5, %vm1360_vm0  ;;  %v2416_v19 = vmul.f32 1.442695, %v2256_v12  ;;  %v2260_v16 = vmul.f32 %v4153_v14, %v2132_v17  ;;  %v914_v14 = vpop.f32.mrb[1].mxu1 }
 0x128   : > { %vm1856_vm13 = vmand %vm5213_vm15, %vm7038_vm7  ;;  %v916_v20 = vpop.f32.mrb[2].mxu1 }
 0x129   : > { %vm5316_vm0 = vmand %vm6932_vm6, %vm1364_vm8  ;;  %v2912_v34 = vsel %vm1856_vm13, %v4333_v63, 0.0  ;;  %2764 = vadd.xlane.f32.xlu0 %v2628_v27  ;;  %4340 = vpow2.f32 %v2416_v19  ;;  %v2424_v6 = vmul.f32 1.442695, %v2260_v16  ;;  %v345_v63 = vadd.s32 112, %v4790_v30  ;;  %v918_v19 = vpop.f32.mrb[3].mxu1 }
 0x12a   : > { %3047 = vadd.xlane.f32.xlu1 %v2912_v34  ;;  %vm7041_vm15 = vmmov %vm7038_vm7  ;;  %v769_v33 = vpop.f32.mrb[20].mxu0  ;;  %vm1368_vm13 = vcmp.ne.s32.totalorder %v376_v11, %v5010_v9  ;;  %v346_v34 = vadd.s32 120, %v4790_v30 }
 0x12b   : > { %vm5327_vm7 = vmand %vm5299_vm4, %vm7041_vm15  ;;  %v4337_v12 = vpop.eup %4336  ;;  %vm6935_vm4 = vcmp.eq.s32.totalorder %v4794_v32, %v4805_v37  ;;  %v4157_v23 = vadd.f32 -0.5, %v769_v33  ;;  %v771_v17 = vpop.f32.mrb[21].mxu0  ;;  %4342 = vpow2.f32 %v2424_v6  ;;  %v378_v13 = vadd.s32 %v5005_v7, %v345_v63 }
 0x12c   : > { %vm7044_vm3 = vmmov %vm7041_vm15  ;;  %v773_v27 = vpop.f32.mrb[22].mxu0  ;;  %v2632_v21 = vsel %vm5177_vm10, %v4337_v12, 0.0  ;;  %v2136_v6 = vsel %vm5327_vm7, -2.0, %v6981_v4  ;;  %v379_v63 = vadd.s32 %v5005_v7, %v346_v34 }
 0x12d   : > { %vm5336_vm8 = vmand %vm5287_vm2, %vm7044_vm3  ;;  %vm7050_vm2 = vcmp.eq.s32.totalorder %v4782_v26, %v4805_v37  ;;  %v4339_v14 = vpop.eup %4338  ;;  %v4161_v22 = vadd.f32 -0.5, %v773_v27  ;;  %v2264_v33 = vmul.f32 %v4157_v23, %v2136_v6  ;;  %v922_v27 = vpop.f32.mrb[4].mxu1  ;;  %v355_v26 = vadd.s32 192, %v4790_v30 }
 0x12e   : > { %vm7047_vm15 = vmmov %vm7044_vm3  ;;  %v2916_v5 = vsel %vm5336_vm8, %v4335_v59, 0.0  ;;  %vm6934_vm8 = vcmp.eq.s32.totalorder %v4800_v35, %v4805_v37  ;;  %2769 = vadd.xlane.f32.xlu1 %v2632_v21  ;;  %v775_v59 = vpop.f32.mrb[23].mxu0  ;;  %v2636_v19 = vsel %vm5197_vm11, %v4339_v14, 0.0  ;;  %v924_v21 = vpop.f32.mrb[5].mxu1 }
 0x12f   : > { %vm5347_vm6 = vmand %vm5316_vm0, %vm7047_vm15  ;;  %vm7053_vm0 = vcmp.eq.s32.totalorder %v4780_v25, %v4805_v37  ;;  %3052 = vadd.xlane.f32.xlu0 %v2916_v5  ;;  %v2432_v20 = vmul.f32 1.442695, %v2264_v33  ;;  %v926_v34 = vpop.f32.mrb[6].mxu1 }
 0x130   : > { %vm5355_vm3 = vmxor %vm7050_vm2, %vm6986_vm14  ;;  %vm1372_vm2 = vcmp.ne.s32.totalorder %v377_v1, %v5010_v9  ;;  %v2140_v1 = vsel %vm5347_vm6, -2.0, %v6981_v4  ;;  %v928_v25 = vpop.f32.mrb[7].mxu1 }
 0x131   : > { %vm5371_vm15 = vmxor %vm7053_vm0, %vm6986_vm14  ;;  %vm7058_vm0 = vcmp.lt.s32.totalorder %v5010_v9, 16  ;;  %v2268_v11 = vmul.f32 %v4161_v22, %v2140_v1  ;;  %4344 = vpow2.f32 %v2432_v20  ;;  %v347_v22 = vadd.s32 128, %v4790_v30 }
 0x132   : > { %vm5383_vm10 = vmand %vm6935_vm4, %vm1368_vm13  ;;  %vm1380_vm4 = vcmp.ne.s32.totalorder %v379_v63, %v5010_v9 }
 0x133   : > { %vm1864_vm5 = vmand %vm5271_vm12, %vm7058_vm0  ;;  %2774 = vadd.xlane.f32.xlu0 %v2636_v19  ;;  %v2440_v3 = vmul.f32 1.442695, %v2268_v11  ;;  %v4341_v6 = vpop.eup %4340 }
 0x134   : > { %vm5398_vm13 = vmand %vm6934_vm8, %vm1372_vm2  ;;  %v2920_v17 = vsel %vm1864_vm5, %v4337_v12, 0.0  ;;  %vm1376_vm2 = vcmp.ne.s32.totalorder %v378_v13, %v5010_v9  ;;  %v779_v12 = vpop.f32.mrb[24].mxu0  ;;  %v2640_v23 = vsel %vm5245_vm1, %v4341_v6, 0.0 }
 0x135   : > { %3057 = vadd.xlane.f32.xlu1 %v2920_v17  ;;  %vm7061_vm12 = vmmov %vm7058_vm0  ;;  %v4165_v59 = vadd.f32 -0.5, %v779_v12  ;;  %v781_v33 = vpop.f32.mrb[25].mxu0  ;;  %4346 = vpow2.f32 %v2440_v3  ;;  %v4343_v19 = vpop.eup %4342  ;;  %v380_v12 = vadd.s32 %v5005_v7, %v347_v22 }
 0x136   : > { %vm5409_vm0 = vmand %vm5383_vm10, %vm7061_vm12  ;;  %vm6936_vm10 = vcmp.eq.s32.totalorder %v4802_v36, %v4805_v37  ;;  %v783_v20 = vpop.f32.mrb[26].mxu0  ;;  %v2644_v22 = vsel %vm5263_vm9, %v4343_v19, 0.0  ;;  %v932_v33 = vpop.f32.mrb[8].mxu1 }
 0x137   : > { %vm7064_vm5 = vmmov %vm7061_vm12  ;;  %v2144_v17 = vsel %vm5409_vm0, -2.0, %v6981_v4  ;;  %v4169_v15 = vadd.f32 -0.5, %v783_v20  ;;  %v785_v27 = vpop.f32.mrb[27].mxu0  ;;  %v934_v20 = vpop.f32.mrb[9].mxu1 }
 0x138   : > { %vm5418_vm11 = vmand %vm5371_vm15, %vm7064_vm5  ;;  %vm7070_vm15 = vcmp.eq.s32.totalorder %v4786_v29, %v4805_v37  ;;  %v2272_v3 = vmul.f32 %v4165_v59, %v2144_v17  ;;  %v349_v17 = vadd.s32 144, %v4790_v30 }
 0x139   : > { %vm7067_vm12 = vmmov %vm7064_vm5  ;;  %v2924_v11 = vsel %vm5418_vm11, %v4339_v14, 0.0  ;;  %v348_v14 = vadd.s32 136, %v4790_v30  ;;  %2779 = vadd.xlane.f32.xlu1 %v2640_v23  ;;  %vm7078_vm11 = vcmp.lt.s32.totalorder %v5010_v9, 16 }
 0x13a   : > { %vm5429_vm8 = vmand %vm5398_vm13, %vm7067_vm12  ;;  %vm7073_vm13 = vcmp.eq.s32.totalorder %v4784_v28, %v4805_v37  ;;  %3062 = vadd.xlane.f32.xlu0 %v2924_v11  ;;  %v2448_v18 = vmul.f32 1.442695, %v2272_v3  ;;  %v936_v11 = vpop.f32.mrb[10].mxu1 }
 0x13b   : > { %vm5437_vm5 = vmxor %vm7070_vm15, %vm6986_vm14  ;;  %vm6937_vm15 = vcmp.eq.s32.totalorder %v4807_v38, %v4805_v37  ;;  %v2148_v21 = vsel %vm5429_vm8, -2.0, %v6981_v4  ;;  %v381_v25 = vadd.s32 %v5005_v7, %v348_v14  ;;  %v4345_v23 = vpop.eup %4344  ;;  %v938_v29 = vpop.f32.mrb[11].mxu1 }
 0x13c   : > { %vm5453_vm12 = vmxor %vm7073_vm13, %vm6986_vm14  ;;  %v2276_v13 = vmul.f32 %v4169_v15, %v2148_v21  ;;  %4348 = vpow2.f32 %v2448_v18  ;;  %v2648_v18 = vsel %vm5327_vm7, %v4345_v23, 0.0  ;;  %vm7096_vm7 = vcmp.eq.s32.totalorder %v4809_v39, %v4805_v37  ;;  %v942_v10 = vpop.f32.mrb[12].mxu1 }
 0x13d   : > { %vm5465_vm1 = vmand %vm6936_vm10, %vm1376_vm2  ;;  %v351_v29 = vadd.s32 160, %v4790_v30 }
 0x13e   : > { %vm1872_vm13 = vmand %vm5355_vm3, %vm7078_vm11  ;;  %2784 = vadd.xlane.f32.xlu0 %v2644_v22  ;;  %v2456_v16 = vmul.f32 1.442695, %v2276_v13 }
 0x13f   : > { %vm5482_vm2 = vmand %vm6937_vm15, %vm1380_vm4  ;;  %v2928_v59 = vsel %vm1872_vm13, %v4341_v6, 0.0  ;;  %v789_v6 = vpop.f32.mrb[28].mxu0  ;;  %vm1384_vm13 = vcmp.ne.s32.totalorder %v380_v12, %v5010_v9  ;;  %v4347_v34 = vpop.eup %4346  ;;  %vm7100_vm15 = vcmp.eq.s32.totalorder %v4813_v40, %v4805_v37  ;;  %v384_v39 = vadd.s32 %v5005_v7, %v351_v29 }
 0x140   : > { %3067 = vadd.xlane.f32.xlu1 %v2928_v59  ;;  %vm7081_vm3 = vmmov %vm7078_vm11  ;;  %v4173_v14 = vadd.f32 -0.5, %v789_v6  ;;  %v791_v15 = vpop.f32.mrb[29].mxu0  ;;  %4350 = vpow2.f32 %v2456_v16  ;;  %v2652_v6 = vsel %vm5347_vm6, %v4347_v34, 0.0 }
 0x141   : > { %vm5493_vm11 = vmand %vm5465_vm1, %vm7081_vm3  ;;  %v793_v28 = vpop.f32.mrb[30].mxu0 }
 0x142   : > { %vm7084_vm4 = vmmov %vm7081_vm3  ;;  %v2152_v13 = vsel %vm5493_vm11, -2.0, %v6981_v4  ;;  %v4177_v59 = vadd.f32 -0.5, %v793_v28  ;;  %v795_v8 = vpop.f32.mrb[31].mxu0 }
 0x143   : > { %vm5501_vm9 = vmand %vm5453_vm12, %vm7084_vm4  ;;  %vm7090_vm12 = vcmp.eq.s32.totalorder %v4794_v32, %v4805_v37  ;;  %v2280_v22 = vmul.f32 %v4173_v14, %v2152_v13 }
 0x144   : > { %vm7087_vm1 = vmmov %vm7081_vm3  ;;  %v2932_v21 = vsel %vm5501_vm9, %v4343_v19, 0.0  ;;  %v350_v19 = vadd.s32 152, %v4790_v30  ;;  %2789 = vadd.xlane.f32.xlu1 %v2648_v18 }
 0x145   : > { %vm5511_vm3 = vmand %vm5482_vm2, %vm7087_vm1  ;;  %vm7093_vm2 = vcmp.eq.s32.totalorder %v4792_v31, %v4805_v37  ;;  %3072 = vadd.xlane.f32.xlu0 %v2932_v21  ;;  %v2464_v16 = vmul.f32 1.442695, %v2280_v22 }
 0x146   : > { %vm5519_vm4 = vmxor %vm7090_vm12, %vm6986_vm14  ;;  %vm1388_vm12 = vcmp.ne.s32.totalorder %v381_v25, %v5010_v9  ;;  %v2156_v33 = vsel %vm5511_vm3, -2.0, %v6981_v4  ;;  %v382_v25 = vadd.s32 %v5005_v7, %v349_v17  ;;  %v383_v11 = vadd.s32 %v5005_v7, %v350_v19  ;;  %v944_v17 = vpop.f32.mrb[13].mxu1  ;;  %v4349_v15 = vpop.eup %4348 }
 0x147   : > { %vm5534_vm1 = vmxor %vm7093_vm2, %vm6986_vm14  ;;  %vm7099_vm2 = vcmp.lt.s32.totalorder %v5010_v9, 16  ;;  %v2284_v12 = vmul.f32 %v4177_v59, %v2156_v33  ;;  %4352 = vpow2.f32 %v2464_v16  ;;  %v946_v14 = vpop.f32.mrb[14].mxu1  ;;  %v2656_v8 = vsel %vm5409_vm0, %v4349_v15, 0.0 }
 0x148   : > { %vm5545_vm9 = vmand %vm7096_vm7, %vm1384_vm13  ;;  %v948_v13 = vpop.f32.mrb[15].mxu1  ;;  %vm7118_vm0 = vcmp.eq.s32.totalorder %v4823_v42, %v4805_v37 }
 0x149   : > { %vm1880_vm10 = vmand %vm5437_vm5, %vm7099_vm2  ;;  %2794 = vadd.xlane.f32.xlu0 %v2652_v6  ;;  %v2472_v1 = vmul.f32 1.442695, %v2284_v12 }
 0x14a   : > { %vm5560_vm13 = vmand %vm7100_vm15, %vm1388_vm12  ;;  %v2936_v20 = vsel %vm1880_vm10, %v4345_v23, 0.0  ;;  %v799_v23 = vpop.f32.mrb[32].mxu0  ;;  %vm1392_vm15 = vcmp.ne.s32.totalorder %v382_v25, %v5010_v9  ;;  %v4351_v31 = vpop.eup %4350 }
 0x14b   : > { %3077 = vadd.xlane.f32.xlu1 %v2936_v20  ;;  %vm7103_vm5 = vmmov %vm7099_vm2  ;;  %v4181_v28 = vadd.f32 -0.5, %v799_v23  ;;  %v801_v21 = vpop.f32.mrb[33].mxu0  ;;  %4354 = vpow2.f32 %v2472_v1  ;;  %v2660_v10 = vsel %vm5429_vm8, %v4351_v31, 0.0 }
 0x14c   : > { %vm5571_vm7 = vmand %vm5545_vm9, %vm7103_vm5  ;;  %v803_v19 = vpop.f32.mrb[34].mxu0 }
 0x14d   : > { %vm7106_vm10 = vmmov %vm7099_vm2  ;;  %v2160_v22 = vsel %vm5571_vm7, -2.0, %v6981_v4  ;;  %v4185_v33 = vadd.f32 -0.5, %v803_v19  ;;  %v805_v5 = vpop.f32.mrb[35].mxu0 }
 0x14e   : > { %vm5579_vm6 = vmand %vm5534_vm1, %vm7106_vm10  ;;  %vm7112_vm1 = vcmp.eq.s32.totalorder %v4800_v35, %v4805_v37  ;;  %vm1396_vm10 = vcmp.ne.s32.totalorder %v383_v11, %v5010_v9  ;;  %v2288_v16 = vmul.f32 %v4181_v28, %v2160_v22  ;;  %v952_v11 = vpop.f32.mrb[16].mxu1  ;;  %v809_v23 = vpop.f32.mrb[36].mxu0 }
 0x14f   : > { %vm7109_vm12 = vmmov %vm7099_vm2  ;;  %v2940_v59 = vsel %vm5579_vm6, %v4347_v34, 0.0  ;;  %v352_v34 = vadd.s32 168, %v4790_v30  ;;  %2799 = vadd.xlane.f32.xlu1 %v2656_v8  ;;  %v954_v17 = vpop.f32.mrb[17].mxu1  ;;  %v4189_v29 = vadd.f32 -0.5, %v809_v23  ;;  %v811_v28 = vpop.f32.mrb[37].mxu0 }
 0x150   : > { %vm5589_vm9 = vmand %vm5560_vm13, %vm7109_vm12  ;;  %vm7115_vm13 = vcmp.eq.s32.totalorder %v4807_v38, %v4805_v37  ;;  %3082 = vadd.xlane.f32.xlu0 %v2940_v59  ;;  %v2480_v20 = vmul.f32 1.442695, %v2288_v16  ;;  %v956_v24 = vpop.f32.mrb[18].mxu1  ;;  %v813_v19 = vpop.f32.mrb[38].mxu0 }
 0x151   : > { %vm5597_vm2 = vmxor %vm7112_vm1, %vm6986_vm14  ;;  %v2164_v12 = vsel %vm5589_vm9, -2.0, %v6981_v4  ;;  %v385_v1 = vadd.s32 %v5005_v7, %v352_v34  ;;  %v4353_v14 = vpop.eup %4352  ;;  %v958_v13 = vpop.f32.mrb[19].mxu1 }
 0x152   : > { %vm5612_vm5 = vmxor %vm7115_vm13, %vm6986_vm14  ;;  %v2292_v25 = vmul.f32 %v4185_v33, %v2164_v12  ;;  %vm7121_vm13 = vcmp.eq.s32.totalorder %v4828_v43, %v4805_v37  ;;  %4356 = vpow2.f32 %v2480_v20  ;;  %v2664_v8 = vsel %vm5493_vm11, %v4353_v14, 0.0  ;;  %v815_v5 = vpop.f32.mrb[39].mxu0 }
 0x153   : > { %vm5623_vm6 = vmand %vm7118_vm0, %vm1392_vm15  ;;  %v4193_v33 = vadd.f32 -0.5, %v813_v19  ;;  %vm7139_vm11 = vcmp.eq.s32.totalorder %v4840_v45, %v4805_v37  ;;  %v388_v5 = vadd.s32 %v5005_v7, %v355_v26 }
 0x154   : > { %vm1888_vm1 = vmand %vm5519_vm4, %vm7109_vm12  ;;  %2804 = vadd.xlane.f32.xlu0 %v2660_v10  ;;  %v2488_v3 = vmul.f32 1.442695, %v2292_v25 }
 0x155   : > { %vm5638_vm15 = vmand %vm7121_vm13, %vm1396_vm10  ;;  %v2944_v6 = vsel %vm1888_vm1, %v4349_v15, 0.0  ;;  %v353_v15 = vadd.s32 176, %v4790_v30  ;;  %v4355_v34 = vpop.eup %4354 }
 0x156   : > { %3087 = vadd.xlane.f32.xlu1 %v2944_v6  ;;  %vm7124_vm4 = vmmov %vm7109_vm12  ;;  %vm1400_vm12 = vcmp.ne.s32.totalorder %v384_v39, %v5010_v9  ;;  %4358 = vpow2.f32 %v2488_v3  ;;  %v2668_v42 = vsel %vm5511_vm3, %v4355_v34, 0.0  ;;  %v962_v6 = vpop.f32.mrb[20].mxu1  ;;  %v819_v3 = vpop.f32.mrb[40].mxu0  ;;  %vm7150_vm3 = vnez %v6939_v41 }
 0x157   : > { %vm5649_vm0 = vmand %vm5623_vm6, %vm7124_vm4  ;;  %v386_v12 = vadd.s32 %v5005_v7, %v353_v15  ;;  %v4197_v24 = vadd.f32 -0.5, %v819_v3 }
 0x158   : > { %vm7127_vm10 = vmmov %vm7124_vm4  ;;  %v2168_v22 = vsel %vm5649_vm0, -2.0, %v6981_v4 }
 0x159   : > { %vm5657_vm8 = vmand %vm5597_vm2, %vm7127_vm10  ;;  %vm7133_vm2 = vcmp.eq.s32.totalorder %v4802_v36, %v4805_v37  ;;  %v354_v36 = vadd.s32 184, %v4790_v30 }
 0x15a   : > { %vm7130_vm6 = vmmov %vm7124_vm4  ;;  %v2948_v59 = vsel %vm5657_vm8, %v4351_v31, 0.0  ;;  %2809 = vadd.xlane.f32.xlu1 %v2664_v8  ;;  %v2296_v31 = vmul.f32 %v4189_v29, %v2168_v22 }
 0x15b   : > { %vm5667_vm1 = vmand %vm5638_vm15, %vm7130_vm6  ;;  %vm1404_vm15 = vcmp.ne.s32.totalorder %v385_v1, %v5010_v9  ;;  %3092 = vadd.xlane.f32.xlu0 %v2948_v59  ;;  %v387_v10 = vadd.s32 %v5005_v7, %v354_v36  ;;  %v964_v1 = vpop.f32.mrb[21].mxu1  ;;  %v356_v59 = vadd.s32 200, %v4790_v30 }
 0x15c   : > { %vm5675_vm13 = vmxor %vm7133_vm2, %vm6986_vm14  ;;  %v2172_v35 = vsel %vm5667_vm1, -2.0, %v6981_v4  ;;  %v2496_v39 = vmul.f32 1.442695, %v2296_v31  ;;  %v966_v17 = vpop.f32.mrb[22].mxu1  ;;  %v4357_v23 = vpop.eup %4356 }
 0x15d   : > { %vm7136_vm14 = vmmov %vm7124_vm4  ;;  %v2300_v45 = vmul.f32 %v4193_v33, %v2172_v35  ;;  %v968_v41 = vpop.f32.mrb[23].mxu1  ;;  %v2672_v28 = vsel %vm5571_vm7, %v4357_v23, 0.0  ;;  %vm7157_vm7 = vnez %v6943_v46  ;;  %v389_v16 = vadd.s32 %v5005_v7, %v356_v59 }
 0x15e   : > { %vm5692_vm4 = vmand %vm5612_vm5, %vm7136_vm14  ;;  %4360 = vpow2.f32 %v2496_v39  ;;  %v972_v18 = vpop.f32.mrb[24].mxu1 }
 0x15f   : > { %vm5701_vm10 = vmand %vm7139_vm11, %vm1400_vm12  ;;  %v2956_v38 = vsel %vm5692_vm4, %v4355_v34, 0.0  ;;  %vm7143_vm12 = vcmp.eq.s32.totalorder %v4852_v47, %v4805_v37  ;;  %2814 = vadd.xlane.f32.xlu0 %v2668_v42  ;;  %v2504_v11 = vmul.f32 1.442695, %v2300_v45  ;;  %vm1408_vm4 = vcmp.ne.s32.totalorder %v386_v12, %v5010_v9  ;;  %v974_v12 = vpop.f32.mrb[25].mxu1 }
 0x160   : > { %vm7142_vm5 = vmmov %vm7130_vm6  ;;  %v4359_v19 = vpop.eup %4358  ;;  %v976_v45 = vpop.f32.mrb[26].mxu1  ;;  %v360_v12 = vadd.s32 232, %v4790_v30 }
 0x161   : > { %vm1896_vm8 = vmand %vm5675_vm13, %vm7142_vm5  ;;  %4362 = vpow2.f32 %v2504_v11  ;;  %v2676_v36 = vsel %vm5589_vm9, %v4359_v19, 0.0 }
 0x162   : > { %vm5720_vm6 = vmand %vm7143_vm12, %vm1404_vm15  ;;  %v2952_v25 = vsel %vm1896_vm8, %v4353_v14, 0.0  ;;  %v821_v14 = vpop.f32.mrb[41].mxu0 }
 0x163   : > { %3097 = vadd.xlane.f32.xlu1 %v2952_v25  ;;  %vm7146_vm2 = vmmov %vm7142_vm5  ;;  %v823_v29 = vpop.f32.mrb[42].mxu0  ;;  %vm1412_vm5 = vcmp.ne.s32.totalorder %v387_v10, %v5010_v9  ;;  %3102 = vadd.xlane.f32.xlu0 %v2956_v38  ;;  %v357_v25 = vadd.s32 208, %v4790_v30 }
 0x164   : > { %vm5731_vm13 = vmand %vm5701_vm10, %vm7146_vm2  ;;  %v4201_v8 = vadd.f32 -0.5, %v823_v29  ;;  %v825_v22 = vpop.f32.mrb[43].mxu0 }
 0x165   : > { %vm7149_vm15 = vmmov %vm7146_vm2  ;;  %v2176_v32 = vsel %vm5731_vm13, -2.0, %v6981_v4  ;;  %v829_v39 = vpop.f32.mrb[44].mxu0 }
 0x166   : > { %vm5739_vm14 = vmand %vm7150_vm3, %vm7149_vm15  ;;  %v2304_v34 = vmul.f32 %v4197_v24, %v2176_v32  ;;  %vm7161_vm15 = vcmp.eq.s32.totalorder %v4877_v51, %v4805_v37  ;;  %v4205_v42 = vadd.f32 -0.5, %v829_v39  ;;  %v831_v6 = vpop.f32.mrb[45].mxu0 }
 0x167   : > { %vm7153_vm11 = vmmov %vm7146_vm2  ;;  %v2960_v13 = vsel %vm5739_vm14, %v4357_v23, 0.0  ;;  %2819 = vadd.xlane.f32.xlu1 %v2672_v28  ;;  %2824 = vadd.xlane.f32.xlu0 %v2676_v36  ;;  %v833_v11 = vpop.f32.mrb[46].mxu0  ;;  %v358_v23 = vadd.s32 216, %v4790_v30  ;;  %v390_v28 = vadd.s32 %v5005_v7, %v357_v25 }
 0x168   : > { %vm5749_vm10 = vmand %vm5720_vm6, %vm7153_vm11  ;;  %vm7160_vm6 = vcmp.eq.s32.totalorder %v4864_v49, %v4805_v37  ;;  %v2512_v63 = vmul.f32 1.442695, %v2304_v34  ;;  %vm7168_vm11 = vnez %v6941_v44  ;;  %v4361_v20 = vpop.eup %4360  ;;  %v978_v44 = vpop.f32.mrb[27].mxu1  ;;  %v4209_v26 = vadd.f32 -0.5, %v833_v11 }
 0x169   : > { %vm7156_vm8 = vmmov %vm7146_vm2  ;;  %v2180_v46 = vsel %vm5749_vm10, -2.0, %v6981_v4  ;;  %v2680_v1 = vsel %vm5649_vm0, %v4361_v20, 0.0  ;;  %v835_v24 = vpop.f32.mrb[47].mxu0  ;;  %vm7175_vm0 = vnez %v6947_v50  ;;  %v982_v21 = vpop.f32.mrb[28].mxu1  ;;  %v393_v11 = vadd.s32 %v5005_v7, %v360_v12 }
 0x16a   : > { %vm5766_vm12 = vmand %vm7157_vm7, %vm7156_vm8  ;;  %v2308_v31 = vmul.f32 %v4201_v8, %v2180_v46  ;;  %4364 = vpow2.f32 %v2512_v63  ;;  %v984_v22 = vpop.f32.mrb[29].mxu1  ;;  %v839_v40 = vpop.f32.mrb[48].mxu0  ;;  %v361_v24 = vadd.s32 240, %v4790_v30 }
 0x16b   : > { %vm1536_vm2 = vmand %vm7160_vm6, %vm1408_vm4  ;;  %v2964_v33 = vsel %vm5766_vm12, %v4359_v19, 0.0  ;;  %3107 = vadd.xlane.f32.xlu1 %v2960_v13  ;;  %v4363_v17 = vpop.eup %4362  ;;  %vm1420_vm6 = vcmp.ne.s32.totalorder %v389_v16, %v5010_v9  ;;  %v391_v19 = vadd.s32 %v5005_v7, %v358_v23  ;;  %v986_v34 = vpop.f32.mrb[30].mxu1  ;;  %v4213_v46 = vadd.f32 -0.5, %v839_v40 }
 0x16c   : > { %vm5788_vm3 = vmand %vm7161_vm15, %vm1412_vm5  ;;  %v2520_v38 = vmul.f32 1.442695, %v2308_v31  ;;  %3112 = vadd.xlane.f32.xlu0 %v2964_v33  ;;  %v2684_v41 = vsel %vm5667_vm1, %v4363_v17, 0.0  ;;  %v359_v33 = vadd.s32 224, %v4790_v30  ;;  %v394_v40 = vadd.s32 %v5005_v7, %v361_v24 }
 0x16d   : > { %vm7164_vm9 = vmmov %vm7156_vm8 }
 0x16e   : > { %vm5795_vm14 = vmand %vm1536_vm2, %vm7164_vm9  ;;  %4366 = vpow2.f32 %v2520_v38 }
 0x16f   : > { %vm7167_vm4 = vmmov %vm7156_vm8  ;;  %vm1416_vm8 = vcmp.ne.s32.totalorder %v388_v5, %v5010_v9  ;;  %v2184_v27 = vsel %vm5795_vm14, -2.0, %v6981_v4  ;;  %2829 = vadd.xlane.f32.xlu1 %v2680_v1  ;;  %v841_v5 = vpop.f32.mrb[49].mxu0 }
 0x170   : > { %vm5803_vm5 = vmand %vm7168_vm11, %vm7167_vm4  ;;  %v2312_v14 = vmul.f32 %v4205_v42, %v2184_v27  ;;  %2834 = vadd.xlane.f32.xlu0 %v2684_v41  ;;  %v843_v31 = vpop.f32.mrb[50].mxu0  ;;  %v392_v42 = vadd.s32 %v5005_v7, %v359_v33  ;;  %v7254_v41 = vld [vmem:[#allocation3_spill] sm:$0xff] }
 0x171   : > { %vm7171_vm7 = vmmov %vm7167_vm4  ;;  %v2968_v3 = vsel %vm5803_vm5, %v4361_v20, 0.0  ;;  %v4217_v39 = vadd.f32 -0.5, %v843_v31  ;;  %v845_v51 = vpop.f32.mrb[51].mxu0 }
 0x172   : > { %vm5813_vm12 = vmand %vm5788_vm3, %vm7171_vm7  ;;  %vm7178_vm3 = vcmp.eq.s32.totalorder %v4889_v52, %v4805_v37  ;;  %v2528_v13 = vmul.f32 1.442695, %v2312_v14  ;;  %vm7186_vm7 = vnez %v6945_v48  ;;  %v988_v48 = vpop.f32.mrb[31].mxu1  ;;  %v362_v52 = vadd.s32 248, %v4790_v30 }
 0x173   : > { %vm7174_vm2 = vmmov %vm7167_vm4  ;;  %v2188_v50 = vsel %vm5813_vm12, -2.0, %v6981_v4  ;;  %vm7179_vm4 = vcmp.eq.s32.totalorder %v4901_v54, %v4805_v37  ;;  %3117 = vadd.xlane.f32.xlu1 %v2968_v3  ;;  %v992_v15 = vpop.f32.mrb[32].mxu1 }
 0x174   : > { %vm5830_vm15 = vmand %vm7175_vm0, %vm7174_vm2  ;;  %v2316_v32 = vmul.f32 %v4209_v26, %v2188_v50  ;;  %4368 = vpow2.f32 %v2528_v13  ;;  %v4365_v36 = vpop.eup %4364  ;;  %v994_v27 = vpop.f32.mrb[33].mxu1 }
 0x175   : > { %vm1544_vm9 = vmand %vm7178_vm3, %vm1416_vm8  ;;  %v2972_v29 = vsel %vm5830_vm15, %v4363_v17, 0.0  ;;  %v2688_v49 = vsel %vm5731_vm13, %v4365_v36, 0.0  ;;  %vm1428_vm3 = vcmp.ne.s32.totalorder %v391_v19, %v5010_v9  ;;  %vm7193_vm13 = vnez %v6951_v53  ;;  %v849_v17 = vpop.f32.mrb[52].mxu0  ;;  %v996_v23 = vpop.f32.mrb[34].mxu1 }
 0x176   : > { %vm5852_vm11 = vmand %vm7179_vm4, %vm1420_vm6  ;;  %v2536_v59 = vmul.f32 1.442695, %v2316_v32  ;;  %3122 = vadd.xlane.f32.xlu0 %v2972_v29  ;;  %v4221_v43 = vadd.f32 -0.5, %v849_v17  ;;  %v851_v14 = vpop.f32.mrb[53].mxu0 }
 0x177   : > { %vm7182_vm1 = vmmov %vm7174_vm2  ;;  %vm1424_vm2 = vcmp.ne.s32.totalorder %v390_v28, %v5010_v9  ;;  %2839 = vadd.xlane.f32.xlu1 %v2688_v49  ;;  %v853_v29 = vpop.f32.mrb[54].mxu0 }
 0x178   : > { %vm5859_vm5 = vmand %vm1544_vm9, %vm7182_vm1  ;;  %4370 = vpow2.f32 %v2536_v59  ;;  %v4367_v38 = vpop.eup %4366  ;;  %v4225_v21 = vadd.f32 -0.5, %v853_v29  ;;  %v855_v19 = vpop.f32.mrb[55].mxu0 }
 0x179   : > { %vm7185_vm8 = vmmov %vm7182_vm1  ;;  %v2192_v16 = vsel %vm5859_vm5, -2.0, %v6981_v4  ;;  %v2692_v20 = vsel %vm5749_vm10, %v4367_v38, 0.0  ;;  %v859_v48 = vpop.f32.mrb[56].mxu0 }
 0x17a   : > { %vm5867_vm6 = vmand %vm7186_vm7, %vm7185_vm8  ;;  %v2320_v45 = vmul.f32 %v4213_v46, %v2192_v16  ;;  %vm7197_vm8 = vcmp.eq.s32.totalorder %v4925_v58, %v4805_v37  ;;  %2844 = vadd.xlane.f32.xlu0 %v2692_v20  ;;  %v4229_v49 = vadd.f32 -0.5, %v859_v48  ;;  %v7257_v48 = vld [vmem:[#allocation7_spill] sm:$0xff]  ;;  %v7263_v16 = vld [vmem:[#allocation8_spill] sm:$0xff] }
 0x17b   : > { %vm7189_vm0 = vmmov %vm7182_vm1  ;;  %v2976_v18 = vsel %vm5867_vm6, %v4365_v36, 0.0  ;;  %v395_v36 = vadd.s32 %v5005_v7, %v362_v52 }
 0x17c   : > { %vm5877_vm15 = vmand %vm5852_vm11, %vm7189_vm0  ;;  %vm7196_vm11 = vcmp.eq.s32.totalorder %v4913_v56, %v4805_v37  ;;  %v2544_v6 = vmul.f32 1.442695, %v2320_v45  ;;  %3127 = vadd.xlane.f32.xlu1 %v2976_v18  ;;  %v861_v18 = vpop.f32.mrb[57].mxu0  ;;  %v7233_v56 = vld [vmem:[#allocation5_spill] sm:$0xff] }
 0x17d   : > { %vm7192_vm9 = vmmov %vm7189_vm0  ;;  %v2196_v53 = vsel %vm5877_vm15, -2.0, %v6981_v4 }
 0x17e   : > { %vm5894_vm4 = vmand %vm7193_vm13, %vm7192_vm9  ;;  %v2324_v44 = vmul.f32 %v4217_v39, %v2196_v53  ;;  %4372 = vpow2.f32 %v2544_v6  ;;  %v4369_v26 = vpop.eup %4368  ;;  %vm1432_vm9 = vcmp.ne.s32.totalorder %v392_v42, %v5010_v9 }
 0x17f   : > { %vm1552_vm1 = vmand %vm7196_vm11, %vm1424_vm2  ;;  %v2980_v25 = vsel %vm5894_vm4, %v4367_v38, 0.0  ;;  %v2696_v50 = vsel %vm5795_vm14, %v4369_v26, 0.0  ;;  %vm1436_vm11 = vcmp.ne.s32.totalorder %v393_v11, %v5010_v9  ;;  %vm7211_vm14 = vnez %v6955_v57  ;;  %v863_v38 = vpop.f32.mrb[58].mxu0 }
 0x180   : > { %vm5916_vm7 = vmand %vm7197_vm8, %vm1428_vm3  ;;  %v2552_v1 = vmul.f32 1.442695, %v2324_v44  ;;  %3132 = vadd.xlane.f32.xlu0 %v2980_v25  ;;  %2849 = vadd.xlane.f32.xlu1 %v2696_v50  ;;  %v4233_v45 = vadd.f32 -0.5, %v863_v38  ;;  %v865_v20 = vpop.f32.mrb[59].mxu0 }
 0x181   : > { %vm7200_vm10 = vmmov %vm7189_vm0  ;;  %v869_v27 = vpop.f32.mrb[60].mxu0 }
 0x182   : > { %vm5923_vm6 = vmand %vm1552_vm1, %vm7200_vm10  ;;  %4374 = vpow2.f32 %v2552_v1  ;;  %v4371_v32 = vpop.eup %4370  ;;  %v871_v24 = vpop.f32.mrb[61].mxu0 }
 0x183   : > { %vm7203_vm2 = vmmov %vm7189_vm0  ;;  %vm7204_vm0 = vnez %v6949_v2  ;;  %v998_v2 = vpop.f32.mrb[35].mxu1  ;;  %v2200_v13 = vsel %vm5923_vm6, -2.0, %v6981_v4  ;;  %v2700_v30 = vsel %vm5813_vm12, %v4371_v32, 0.0 }
 0x184   : > { %vm5931_vm3 = vmand %vm7204_vm0, %vm7203_vm2  ;;  %v2328_v59 = vmul.f32 %v4221_v43, %v2200_v13  ;;  %v1002_v10 = vpop.f32.mrb[36].mxu1  ;;  %2854 = vadd.xlane.f32.xlu0 %v2700_v30  ;;  %v873_v2 = vpop.f32.mrb[62].mxu0 }
 0x185   : > { %vm7207_vm13 = vmmov %vm7203_vm2  ;;  %v2984_v28 = vsel %vm5931_vm3, %v4369_v26, 0.0  ;;  %v1004_v5 = vpop.f32.mrb[37].mxu1  ;;  %v4237_v26 = vadd.f32 -0.5, %v869_v27  ;;  %v875_v52 = vpop.f32.mrb[63].mxu0 }
 0x186   : > { %vm5941_vm4 = vmand %vm5916_vm7, %vm7207_vm13  ;;  %vm7214_vm7 = vcmp.eq.s32.totalorder %v4937_v60, %v4805_v37  ;;  %v2560_v54 = vmul.f32 1.442695, %v2328_v59  ;;  %3137 = vadd.xlane.f32.xlu1 %v2984_v28  ;;  %vm7222_vm13 = vnez %v6953_v55  ;;  %v1006_v7 = vpop.f32.mrb[38].mxu1 }
 0x187   : > { %vm7210_vm1 = vmmov %vm7203_vm2  ;;  %v2204_v57 = vsel %vm5941_vm4, -2.0, %v6981_v4  ;;  %vm7215_vm2 = vcmp.eq.s32.totalorder %v4949_v62, %v4805_v37  ;;  %v1008_v55 = vpop.f32.mrb[39].mxu1 }
 0x188   : > { %vm5958_vm8 = vmand %vm7211_vm14, %vm7210_vm1  ;;  %v2332_v34 = vmul.f32 %v4225_v21, %v2204_v57  ;;  %4376 = vpow2.f32 %v2560_v54  ;;  %v4373_v31 = vpop.eup %4372  ;;  %v7249_v21 = vld [vmem:[#allocation4_spill] sm:$0xff]  ;;  %v7260_v55 = vld [vmem:[#allocation6_spill] sm:$0xff] }
 0x189   : > { %vm1560_vm10 = vmand %vm7214_vm7, %vm1432_vm9  ;;  %v2988_v22 = vsel %vm5958_vm8, %v4371_v32, 0.0  ;;  %v2704_v12 = vsel %vm5859_vm5, %v4373_v31, 0.0  ;;  %vm1444_vm7 = vcmp.ne.s32.totalorder %v395_v36, %v5010_v9  ;;  %vm7232_vm5 = vcmp.eq.s32.totalorder %v4961_v0, %v4805_v37  ;;  %v1012_v0 = vpop.f32.mrb[40].mxu1 }
 0x18a   : > { %vm5980_vm0 = vmand %vm7215_vm2, %vm1436_vm11  ;;  %v2568_v33 = vmul.f32 1.442695, %v2332_v34  ;;  %3142 = vadd.xlane.f32.xlu0 %v2988_v22  ;;  %2859 = vadd.xlane.f32.xlu1 %v2704_v12  ;;  %vm7229_vm2 = vnez %v6960_v61  ;;  %v1014_v1 = vpop.f32.mrb[41].mxu1  ;;  %v4241_v32 = vadd.f32 -0.5, %v873_v2 }
 0x18b   : > { %vm7218_vm12 = vmmov %vm7210_vm1  ;;  %v1016_v58 = vpop.f32.mrb[42].mxu1 }
 0x18c   : > { %vm5987_vm3 = vmand %vm1560_vm10, %vm7218_vm12  ;;  %4378 = vpow2.f32 %v2568_v33  ;;  %v4375_v47 = vpop.eup %4374  ;;  %v1018_v14 = vpop.f32.mrb[43].mxu1 }
 0x18d   : > { %vm7221_vm9 = vmmov %vm7210_vm1  ;;  %vm1440_vm1 = vcmp.ne.s32.totalorder %v394_v40, %v5010_v9  ;;  %v2208_v51 = vsel %vm5987_vm3, -2.0, %v6981_v4  ;;  %v2708_v53 = vsel %vm5877_vm15, %v4375_v47, 0.0  ;;  %v1022_v40 = vpop.f32.mrb[44].mxu1 }
 0x18e   : > { %vm5995_vm11 = vmand %vm7222_vm13, %vm7221_vm9  ;;  %v2336_v25 = vmul.f32 %v4229_v49, %v2208_v51  ;;  %2864 = vadd.xlane.f32.xlu0 %v2708_v53  ;;  %v1024_v34 = vpop.f32.mrb[45].mxu1 }
 0x18f   : > { %vm7225_vm14 = vmmov %vm7221_vm9  ;;  %v2992_v39 = vsel %vm5995_vm11, %v4373_v31, 0.0  ;;  %v1026_v60 = vpop.f32.mrb[46].mxu1 }
 0x190   : > { %vm6004_vm8 = vmand %vm5980_vm0, %vm7225_vm14  ;;  %v2576_v6 = vmul.f32 1.442695, %v2336_v25  ;;  %3147 = vadd.xlane.f32.xlu1 %v2992_v39  ;;  %v1028_v36 = vpop.f32.mrb[47].mxu1 }
 0x191   : > { %vm7228_vm10 = vmmov %vm7221_vm9  ;;  %v2212_v61 = vsel %vm6004_vm8, -2.0, %v6981_v4  ;;  %vm7234_vm9 = vcmp.eq.s32.totalorder %v7233_v56, %v4805_v37  ;;  %v7241_v37 = vld [vmem:[#allocation2_spill] sm:$0xff]  ;;  %v1032_v31 = vpop.f32.mrb[48].mxu1 }
 0x192   : > { %vm6020_vm0 = vmand %vm7229_vm2, %vm7228_vm10  ;;  %v2340_v44 = vmul.f32 %v4233_v45, %v2212_v61  ;;  %4380 = vpow2.f32 %v2576_v6  ;;  %vm7242_vm14 = vnez %v7241_v37  ;;  %v4377_v23 = vpop.eup %4376  ;;  %v1034_v49 = vpop.f32.mrb[49].mxu1 }
 0x193   : > { %vm1568_vm12 = vmand %vm7232_vm5, %vm1440_vm1  ;;  %v2996_v42 = vsel %vm6020_vm0, %v4375_v47, 0.0  ;;  %v2712_v29 = vsel %vm5923_vm6, %v4377_v23, 0.0  ;;  %vm7250_vm5 = vnez %v7249_v21  ;;  %v1036_v18 = vpop.f32.mrb[50].mxu1 }
 0x194   : > { %vm6039_vm13 = vmand %vm7234_vm9, %vm1444_vm7  ;;  %v2584_v63 = vmul.f32 1.442695, %v2340_v44  ;;  %3152 = vadd.xlane.f32.xlu0 %v2996_v42  ;;  %2869 = vadd.xlane.f32.xlu1 %v2712_v29  ;;  %v1038_v38 = vpop.f32.mrb[51].mxu1 }
 0x195   : > { %vm7237_vm15 = vmmov %vm7228_vm10  ;;  %v1042_v20 = vpop.f32.mrb[52].mxu1 }
 0x196   : > { %vm6045_vm11 = vmand %vm1568_vm12, %vm7237_vm15  ;;  %4382 = vpow2.f32 %v2584_v63  ;;  %v4379_v13 = vpop.eup %4378  ;;  %vm7258_vm15 = vnez %v7257_v48  ;;  %v1044_v8 = vpop.f32.mrb[53].mxu1 }
 0x197   : > { %vm7240_vm1 = vmmov %vm7228_vm10  ;;  %v2216_v28 = vsel %vm6045_vm11, -2.0, %v6981_v4  ;;  %v2716_v35 = vsel %vm5941_vm4, %v4379_v13, 0.0  ;;  %vm7255_vm4 = vnez %v7254_v41  ;;  %v1046_v25 = vpop.f32.mrb[54].mxu1 }
 0x198   : > { %vm6053_vm7 = vmand %vm7242_vm14, %vm7240_vm1  ;;  %v2344_v3 = vmul.f32 %v4237_v26, %v2216_v28  ;;  %2874 = vadd.xlane.f32.xlu0 %v2716_v35  ;;  %vm7261_vm14 = vnez %v7260_v55  ;;  %v1048_v53 = vpop.f32.mrb[55].mxu1 }
 0x199   : > { %vm7245_vm10 = vmmov %vm7240_vm1  ;;  %v3000_v50 = vsel %vm6053_vm7, %v4377_v23, 0.0  ;;  %v1052_v42 = vpop.f32.mrb[56].mxu1 }
 0x19a   : > { %vm6061_vm2 = vmand %vm6039_vm13, %vm7245_vm10  ;;  %v2592_v22 = vmul.f32 1.442695, %v2344_v3  ;;  %3157 = vadd.xlane.f32.xlu1 %v3000_v50  ;;  %vm7264_vm10 = vnez %v7263_v16  ;;  %v1054_v61 = vpop.f32.mrb[57].mxu1 }
 0x19b   : > { %vm7248_vm0 = vmmov %vm7240_vm1  ;;  %v2220_v30 = vsel %vm6061_vm2, -2.0, %v6981_v4  ;;  %v1056_v6 = vpop.f32.mrb[58].mxu1 }
 0x19c   : > { %vm6076_vm12 = vmand %vm7250_vm5, %vm7248_vm0  ;;  %v2348_v57 = vmul.f32 %v4241_v32, %v2220_v30  ;;  %4384 = vpow2.f32 %v2592_v22  ;;  %v4381_v10 = vpop.eup %4380  ;;  %v1058_v44 = vpop.f32.mrb[59].mxu1 }
 0x19d   : > { %v3004_v59 = vsel %vm6076_vm12, %v4379_v13, 0.0  ;;  %vm7253_vm6 = vmmov %vm7248_vm0  ;;  %v2720_v4 = vsel %vm5987_vm3, %v4381_v10, 0.0  ;;  %v1062_v56 = vpop.f32.mrb[60].mxu1 }
 0x19e   : > { %v2600_v54 = vmul.f32 1.442695, %v2348_v57  ;;  %vm1952_vm9 = vmand %vm7255_vm4, %vm7253_vm6  ;;  %3162 = vadd.xlane.f32.xlu0 %v3004_v59  ;;  %2879 = vadd.xlane.f32.xlu1 %v2720_v4  ;;  %v1064_v9 = vpop.f32.mrb[61].mxu1 }
 0x19f   : > { %v3008_v33 = vsel %vm1952_vm9, %v4381_v10, 0.0  ;;  %vm7256_vm13 = vmmov %vm7248_vm0  ;;  %v1066_v1 = vpop.f32.mrb[62].mxu1 }
 0x1a0   : > { %4386 = vpow2.f32 %v2600_v54  ;;  %v4383_v5 = vpop.eup %4382  ;;  %vm1956_vm1 = vmand %vm7258_vm15, %vm7256_vm13  ;;  %v1068_v27 = vpop.f32.mrb[63].mxu1 }
 0x1a1   : > { %v2724_v62 = vsel %vm6004_vm8, %v4383_v5, 0.0  ;;  %v3012_v7 = vsel %vm1956_vm1, %v4383_v5, 0.0  ;;  %vm7259_vm3 = vmmov %vm7248_vm0 }
 0x1a2   : > { %3167 = vadd.xlane.f32.xlu1 %v3008_v33  ;;  %2884 = vadd.xlane.f32.xlu0 %v2724_v62  ;;  %vm1960_vm7 = vmand %vm7261_vm14, %vm7259_vm3  ;;  %v3028_v15 = vpop.xlane.xlu1 %3027  ;;  %v2740_v0 = vpop.xlane.xlu0 %2739 }
 0x1a3   : > { %vm7262_vm8 = vmmov %vm7248_vm0  ;;  %v3601_v63 = vadd.f32 1.0, %v3028_v15  ;;  %v3248_v11 = vadd.f32 1.0, %v2740_v0  ;;  %v3604_v58 = vmul.f32 -0.5, %v3028_v15  ;;  %v3251_v23 = vmul.f32 -0.5, %v2740_v0 }
 0x1a4   : > { %vm1964_vm0 = vmand %vm7264_vm10, %vm7262_vm8  ;;  %v3607_v43 = vand.u32 2147483647, %v3028_v15  ;;  %v3254_v14 = vand.u32 2147483647, %v2740_v0 }
 0x1a5   : > { %4388 = vlog2.f32 %v3601_v63  ;;  %v3605_v28 = vadd.f32 1.0, %v3604_v58  ;;  %v3252_v13 = vadd.f32 1.0, %v3251_v23 }
 0x1a6   : > { %v4385_v46 = vpop.eup %4384  ;;  %3172 = vadd.xlane.f32.xlu0 %v3012_v7  ;;  %4390 = vlog2.f32 %v3248_v11  ;;  %v3033_v37 = vpop.xlane.xlu0 %3032  ;;  %vm6125_vm5 = vcmp.lt.f32.partialorder %v3254_v14, 0.0004427343 }
 0x1a7   : > { %v2728_v12 = vsel %vm6045_vm11, %v4385_v46, 0.0  ;;  %v3016_v39 = vsel %vm1960_vm7, %v4385_v46, 0.0  ;;  %v6111_v17 = vpop.xlane.xlu1 %2744  ;;  %v3610_v26 = vadd.f32 1.0, %v3033_v37  ;;  %v3613_v2 = vmul.f32 -0.5, %v3033_v37 }
 0x1a8   : > { %2889 = vadd.xlane.f32.xlu1 %v2728_v12  ;;  %v3257_v24 = vadd.f32 1.0, %v6111_v17  ;;  %v3260_v32 = vmul.f32 -0.5, %v6111_v17  ;;  %vm3568_vm11 = vcmask 7168   ;;  %v3616_v19 = vand.u32 2147483647, %v3033_v37 }
 0x1a9   : > { %4392 = vlog2.f32 %v3610_v26  ;;  %v3614_v59 = vadd.f32 1.0, %v3613_v2  ;;  %v3606_v57 = vmul.f32 %v3605_v28, %v3028_v15  ;;  %v3253_v40 = vmul.f32 %v3252_v13, %v2740_v0 }
 0x1aa   : > { %v4387_v51 = vpop.eup %4386  ;;  %4394 = vlog2.f32 %v3257_v24  ;;  %v6116_v50 = vpop.xlane.xlu0 %2749  ;;  %v3261_v54 = vadd.f32 1.0, %v3260_v32  ;;  %v3263_v41 = vand.u32 2147483647, %v6111_v17  ;;  %vm6135_vm12 = vcmp.lt.f32.partialorder %v3616_v19, 0.0004427343 }
 0x1ab   : > { %v2732_v47 = vsel %vm6061_vm2, %v4387_v51, 0.0  ;;  %v3020_v45 = vsel %vm1964_vm0, %v4387_v51, 0.0  ;;  %v6114_v29 = vpop.xlane.xlu1 %3037  ;;  %v3266_v21 = vadd.f32 1.0, %v6116_v50  ;;  %vm6121_vm2 = vcmp.lt.f32.partialorder %v3607_v43, 0.0004427343 }
 0x1ac   : > { %3177 = vadd.xlane.f32.xlu1 %v3016_v39  ;;  %2894 = vadd.xlane.f32.xlu0 %v2732_v47  ;;  %v3619_v52 = vadd.f32 1.0, %v6114_v29  ;;  %v3622_v36 = vmul.f32 -0.5, %v6114_v29  ;;  %v3269_v4 = vmul.f32 -0.5, %v6116_v50  ;;  %v3615_v7 = vmul.f32 %v3614_v59, %v3033_v37 }
 0x1ad   : > { %v3625_v31 = vand.u32 2147483647, %v6114_v29  ;;  %v3272_v49 = vand.u32 2147483647, %v6116_v50  ;;  %v3262_v39 = vmul.f32 %v3261_v54, %v6111_v17  ;;  %vm3264_vm6 = vcmp.lt.f32.partialorder %v3263_v41, 0.0004427343 }
 0x1ae   : > { %4396 = vlog2.f32 %v3619_v52  ;;  %v6129_v30 = vpop.xlane.xlu0 %2754  ;;  %v3623_v20 = vadd.f32 1.0, %v3622_v36  ;;  %v3270_v8 = vadd.f32 1.0, %v3269_v4 }
 0x1af   : > { %4398 = vlog2.f32 %v3266_v21  ;;  %v4389_v22 = vpop.eup %4388  ;;  %v3275_v34 = vadd.f32 1.0, %v6129_v30  ;;  %v3278_v48 = vmul.f32 -0.5, %v6129_v30  ;;  %vm6171_vm4 = vcmp.lt.f32.partialorder %v3625_v31, 0.0004427343 }
 0x1b0   : > { %3182 = vadd.xlane.f32.xlu0 %v3020_v45  ;;  %v4391_v60 = vpop.eup %4390  ;;  %v3603_v10 = vmul.f32 0.6931472, %v4389_v22  ;;  %vm6175_vm9 = vcmp.lt.f32.partialorder %v3272_v49, 0.0004427343  ;;  %v3624_v17 = vmul.f32 %v3623_v20, %v6114_v29  ;;  %v3281_v58 = vand.u32 2147483647, %v6129_v30 }
 0x1b1   : > { %v3250_v33 = vmul.f32 0.6931472, %v4391_v60  ;;  %4400 = vlog2.f32 %v3275_v34  ;;  %v3279_v53 = vadd.f32 1.0, %v3278_v48  ;;  %v3271_v26 = vmul.f32 %v3270_v8, %v6116_v50 }
 0x1b2   : > { %v3609_v62 = vsel %vm6121_vm2, %v3606_v57, %v3603_v10  ;;  %v6150_v18 = vpop.xlane.xlu0 %3042  ;;  %v6152_v46 = vpop.xlane.xlu1 %2759  ;;  %vm3282_vm13 = vcmp.lt.f32.partialorder %v3281_v58, 0.0004427343 }
 0x1b3   : > { %v4393_v55 = vpop.eup %4392  ;;  %v3889_v38 = vmul.f32 0.02, %v3609_v62  ;;  %v3256_v12 = vsel %vm6125_vm5, %v3253_v40, %v3250_v33  ;;  %v3628_v51 = vadd.f32 1.0, %v6150_v18  ;;  %v3284_v42 = vadd.f32 1.0, %v6152_v46 }
 0x1b4   : > { %v4395_v16 = vpop.eup %4394  ;;  %v3536_v47 = vmul.f32 0.5, %v3256_v12  ;;  %v3612_v45 = vmul.f32 0.6931472, %v4393_v55  ;;  %v3631_v11 = vmul.f32 -0.5, %v6150_v18  ;;  %v3280_v24 = vmul.f32 %v3279_v53, %v6129_v30 }
 0x1b5   : > { %3921 = vst.msk [vmem:[%s6144_s7] sm:$0xff] %vm3568_vm11, %v3889_v38  ;;  %v3259_v25 = vmul.f32 0.6931472, %v4395_v16  ;;  %4402 = vlog2.f32 %v3628_v51  ;;  %v3634_v2 = vand.u32 2147483647, %v6150_v18  ;;  %v3287_v29 = vmul.f32 -0.5, %v6152_v46 }
 0x1b6   : > { %3569 = vst.msk [vmem:[%s6158_s11] sm:$0xff] %vm3568_vm11, %v3536_v47  ;;  %v3618_v61 = vsel %vm6135_vm12, %v3615_v7, %v3612_v45  ;;  %v6181_v9 = vpop.xlane.xlu0 %2764  ;;  %4404 = vlog2.f32 %v3284_v42  ;;  %v3632_v19 = vadd.f32 1.0, %v3631_v11  ;;  %v3290_v30 = vand.u32 2147483647, %v6152_v46 }
 0x1b7   : > { %v6179_v56 = vpop.xlane.xlu1 %3047  ;;  %v3890_v0 = vmul.f32 0.02, %v3618_v61  ;;  %v3265_v63 = vsel %vm3264_vm6, %v3262_v39, %v3259_v25  ;;  %v3293_v28 = vadd.f32 1.0, %v6181_v9  ;;  %v3296_v22 = vmul.f32 -0.5, %v6181_v9 }
 0x1b8   : > { %v4397_v15 = vpop.eup %4396  ;;  %v3537_v27 = vmul.f32 0.5, %v3265_v63  ;;  %v3637_v43 = vadd.f32 1.0, %v6179_v56  ;;  %v3640_v59 = vmul.f32 -0.5, %v6179_v56  ;;  %vm6212_vm15 = vcmp.lt.f32.partialorder %v3634_v2, 0.0004427343 }
 0x1b9   : > { %v4399_v1 = vpop.eup %4398  ;;  %v3621_v37 = vmul.f32 0.6931472, %v4397_v15  ;;  %3922 = vst.msk [vmem:[%s6144_s7 + $0x8] sm:$0xff] %vm3568_vm11, %v3890_v0  ;;  %v3288_v34 = vadd.f32 1.0, %v3287_v29  ;;  %v3633_v33 = vmul.f32 %v3632_v19, %v6150_v18  ;;  %v3643_v5 = vand.u32 2147483647, %v6179_v56 }
 0x1ba   : > { %v3268_v23 = vmul.f32 0.6931472, %v4399_v1  ;;  %3570 = vst.msk [vmem:[%s6158_s11 + $0x8] sm:$0xff] %vm3568_vm11, %v3537_v27  ;;  %4406 = vlog2.f32 %v3637_v43  ;;  %v3641_v62 = vadd.f32 1.0, %v3640_v59  ;;  %vm6226_vm1 = vcmp.lt.f32.partialorder %v3290_v30, 0.0004427343 }
 0x1bb   : > { %v3627_v14 = vsel %vm6171_vm4, %v3624_v17, %v3621_v37  ;;  %v6200_v50 = vpop.xlane.xlu1 %2769  ;;  %v4401_v32 = vpop.eup %4400  ;;  %4408 = vlog2.f32 %v3293_v28  ;;  %v3297_v55 = vadd.f32 1.0, %v3296_v22  ;;  %v3299_v38 = vand.u32 2147483647, %v6181_v9 }
 0x1bc   : > { %v6198_v13 = vpop.xlane.xlu0 %3052  ;;  %v3891_v52 = vmul.f32 0.02, %v3627_v14  ;;  %v3274_v21 = vsel %vm6175_vm9, %v3271_v26, %v3268_v23  ;;  %v3277_v35 = vmul.f32 0.6931472, %v4401_v32  ;;  %v3302_v60 = vadd.f32 1.0, %v6200_v50 }
 0x1bd   : > { %v3538_v3 = vmul.f32 0.5, %v3274_v21  ;;  %v3646_v57 = vadd.f32 1.0, %v6198_v13  ;;  %v3649_v7 = vmul.f32 -0.5, %v6198_v13  ;;  %v3289_v51 = vmul.f32 %v3288_v34, %v6152_v46 }
 0x1be   : > { %3923 = vst.msk [vmem:[%s6144_s7 + $0x10] sm:$0xff] %vm3568_vm11, %v3891_v52  ;;  %v3283_v40 = vsel %vm3282_vm13, %v3280_v24, %v3277_v35  ;;  %v3652_v16 = vand.u32 2147483647, %v6198_v13  ;;  %vm6240_vm3 = vcmp.lt.f32.partialorder %v3643_v5, 0.0004427343  ;;  %v3305_v25 = vmul.f32 -0.5, %v6200_v50 }
 0x1bf   : > { %3571 = vst.msk [vmem:[%s6158_s11 + $0x10] sm:$0xff] %vm3568_vm11, %v3538_v3  ;;  %v4403_v36 = vpop.eup %4402  ;;  %v3539_v4 = vmul.f32 0.5, %v3283_v40  ;;  %4410 = vlog2.f32 %v3646_v57  ;;  %v3642_v42 = vmul.f32 %v3641_v62, %v6179_v56  ;;  %v3650_v46 = vadd.f32 1.0, %v3649_v7 }
 0x1c0   : > { %v6219_v41 = vpop.xlane.xlu0 %2774  ;;  %v3630_v48 = vmul.f32 0.6931472, %v4403_v36  ;;  %4412 = vlog2.f32 %v3302_v60  ;;  %v4405_v31 = vpop.eup %4404  ;;  %v3298_v15 = vmul.f32 %v3297_v55, %v6181_v9  ;;  %vm6252_vm14 = vcmp.lt.f32.partialorder %v3299_v38, 0.0004427343 }
 0x1c1   : > { %3572 = vst.msk [vmem:[%s6158_s11 + $0x18] sm:$0xff] %vm3568_vm11, %v3539_v4  ;;  %v3286_v39 = vmul.f32 0.6931472, %v4405_v31  ;;  %v3311_v61 = vadd.f32 1.0, %v6219_v41  ;;  %vm6257_vm7 = vcmp.lt.f32.partialorder %v3652_v16, 0.0004427343  ;;  %v3651_v43 = vmul.f32 %v3650_v46, %v6198_v13 }
 0x1c2   : > { %v6217_v10 = vpop.xlane.xlu1 %3057  ;;  %v3636_v12 = vsel %vm6212_vm15, %v3633_v33, %v3630_v48  ;;  %v3306_v58 = vadd.f32 1.0, %v3305_v25  ;;  %v3308_v23 = vand.u32 2147483647, %v6200_v50  ;;  %v3314_v26 = vmul.f32 -0.5, %v6219_v41 }
 0x1c3   : > { %v3655_v18 = vadd.f32 1.0, %v6217_v10  ;;  %v3892_v20 = vmul.f32 0.02, %v3636_v12  ;;  %v3292_v53 = vsel %vm6226_vm1, %v3289_v51, %v3286_v39  ;;  %v3658_v63 = vmul.f32 -0.5, %v6217_v10 }
 0x1c4   : > { %v4407_v6 = vpop.eup %4406  ;;  %v3540_v44 = vmul.f32 0.5, %v3292_v53  ;;  %v3661_v52 = vand.u32 2147483647, %v6217_v10  ;;  %v3307_v22 = vmul.f32 %v3306_v58, %v6200_v50  ;;  %v3315_v57 = vadd.f32 1.0, %v3314_v26 }
 0x1c5   : > { %4414 = vlog2.f32 %v3655_v18  ;;  %3924 = vst.msk [vmem:[%s6144_s7 + $0x18] sm:$0xff] %vm3568_vm11, %v3892_v20  ;;  %v4409_v11 = vpop.eup %4408  ;;  %v3639_v1 = vmul.f32 0.6931472, %v4407_v6  ;;  %v3659_v32 = vadd.f32 1.0, %v3658_v63  ;;  %v3317_v40 = vand.u32 2147483647, %v6219_v41 }
 0x1c6   : > { %v6238_v45 = vpop.xlane.xlu1 %2779  ;;  %4416 = vlog2.f32 %v3311_v61  ;;  %3573 = vst.msk [vmem:[%s6158_s11 + $0x20] sm:$0xff] %vm3568_vm11, %v3540_v44  ;;  %v3295_v9 = vmul.f32 0.6931472, %v4409_v11  ;;  %vm3309_vm8 = vcmp.lt.f32.partialorder %v3308_v23, 0.0004427343  ;;  %v3316_v55 = vmul.f32 %v3315_v57, %v6219_v41 }
 0x1c7   : > { %v6236_v47 = vpop.xlane.xlu0 %3062  ;;  %v3645_v24 = vsel %vm6240_vm3, %v3642_v42, %v3639_v1  ;;  %v3320_v14 = vadd.f32 1.0, %v6238_v45  ;;  %v3323_v34 = vmul.f32 -0.5, %v6238_v45  ;;  %v3660_v50 = vmul.f32 %v3659_v32, %v6217_v10 }
 0x1c8   : > { %v3664_v27 = vadd.f32 1.0, %v6236_v47  ;;  %v3893_v29 = vmul.f32 0.02, %v3645_v24  ;;  %v3301_v28 = vsel %vm6252_vm14, %v3298_v15, %v3295_v9  ;;  %v3667_v35 = vmul.f32 -0.5, %v6236_v47 }
 0x1c9   : > { %v4411_v2 = vpop.eup %4410  ;;  %v3541_v19 = vmul.f32 0.5, %v3301_v28  ;;  %v3670_v5 = vand.u32 2147483647, %v6236_v47  ;;  %vm3662_vm10 = vcmp.lt.f32.partialorder %v3661_v52, 0.0004427343  ;;  %v3324_v39 = vadd.f32 1.0, %v3323_v34 }
 0x1ca   : > { %4418 = vlog2.f32 %v3664_v27  ;;  %v4413_v21 = vpop.eup %4412  ;;  %v3648_v3 = vmul.f32 0.6931472, %v4411_v2  ;;  %3925 = vst.msk [vmem:[%s6144_s7 + $0x20] sm:$0xff] %vm3568_vm11, %v3893_v29  ;;  %v3668_v7 = vadd.f32 1.0, %v3667_v35  ;;  %vm6301_vm0 = vcmp.lt.f32.partialorder %v3317_v40, 0.0004427343 }
 0x1cb   : > { %v6264_v17 = vpop.xlane.xlu0 %2784  ;;  %4420 = vlog2.f32 %v3320_v14  ;;  %v3304_v30 = vmul.f32 0.6931472, %v4413_v21  ;;  %3574 = vst.msk [vmem:[%s6158_s11 + $0x28] sm:$0xff] %vm3568_vm11, %v3541_v19  ;;  %vm6310_vm2 = vcmp.lt.f32.partialorder %v3670_v5, 0.0004427343  ;;  %v3325_v1 = vmul.f32 %v3324_v39, %v6238_v45 }
 0x1cc   : > { %v3654_v54 = vsel %vm6257_vm7, %v3651_v43, %v3648_v3  ;;  %v3329_v10 = vadd.f32 1.0, %v6264_v17  ;;  %v3669_v53 = vmul.f32 %v3668_v7, %v6236_v47  ;;  %v3326_v42 = vand.u32 2147483647, %v6238_v45 }
 0x1cd   : > { %v6262_v37 = vpop.xlane.xlu1 %3067  ;;  %v3894_v4 = vmul.f32 0.02, %v3654_v54  ;;  %v3310_v33 = vsel %vm3309_vm8, %v3307_v22, %v3304_v30  ;;  %v3332_v46 = vmul.f32 -0.5, %v6264_v17  ;;  %v3335_v23 = vand.u32 2147483647, %v6264_v17 }
 0x1ce   : > { %v3673_v60 = vadd.f32 1.0, %v6262_v37  ;;  %v3542_v48 = vmul.f32 0.5, %v3310_v33  ;;  %v3676_v51 = vmul.f32 -0.5, %v6262_v37  ;;  %v3679_v27 = vand.u32 2147483647, %v6262_v37 }
 0x1cf   : > { %v4415_v36 = vpop.eup %4414  ;;  %3926 = vst.msk [vmem:[%s6144_s7 + $0x28] sm:$0xff] %vm3568_vm11, %v3894_v4  ;;  %vm3327_vm5 = vcmp.lt.f32.partialorder %v3326_v42, 0.0004427343  ;;  %v3333_v29 = vadd.f32 1.0, %v3332_v46  ;;  %vm6349_vm6 = vcmp.lt.f32.partialorder %v3335_v23, 0.0004427343 }
 0x1d0   : > { %v3657_v62 = vmul.f32 0.6931472, %v4415_v36  ;;  %4422 = vlog2.f32 %v3673_v60  ;;  %v4417_v18 = vpop.eup %4416  ;;  %3575 = vst.msk [vmem:[%s6158_s11 + $0x30] sm:$0xff] %vm3568_vm11, %v3542_v48  ;;  %v3677_v56 = vadd.f32 1.0, %v3676_v51  ;;  %vm6343_vm12 = vcmp.lt.f32.partialorder %v3679_v27, 0.0004427343 }
 0x1d1   : > { %v6280_v13 = vpop.xlane.xlu1 %2789  ;;  %v3313_v8 = vmul.f32 0.6931472, %v4417_v18  ;;  %4424 = vlog2.f32 %v3329_v10  ;;  %v3334_v33 = vmul.f32 %v3333_v29, %v6264_v17 }
 0x1d2   : > { %v6278_v59 = vpop.xlane.xlu0 %3072  ;;  %v3663_v12 = vsel %vm3662_vm10, %v3660_v50, %v3657_v62  ;;  %v3338_v47 = vadd.f32 1.0, %v6280_v13  ;;  %v3341_v24 = vmul.f32 -0.5, %v6280_v13  ;;  %v3678_v30 = vmul.f32 %v3677_v56, %v6262_v37 }
 0x1d3   : > { %v3682_v16 = vadd.f32 1.0, %v6278_v59  ;;  %v3895_v20 = vmul.f32 0.02, %v3663_v12  ;;  %v3319_v44 = vsel %vm6301_vm0, %v3316_v55, %v3313_v8  ;;  %v3685_v0 = vmul.f32 -0.5, %v6278_v59 }
 0x1d4   : > { %v4419_v25 = vpop.eup %4418  ;;  %v3543_v11 = vmul.f32 0.5, %v3319_v44  ;;  %v3688_v32 = vand.u32 2147483647, %v6278_v59  ;;  %v3342_v40 = vadd.f32 1.0, %v3341_v24  ;;  %v3344_v54 = vand.u32 2147483647, %v6280_v13 }
 0x1d5   : > { %4426 = vlog2.f32 %v3682_v16  ;;  %3927 = vst.msk [vmem:[%s6144_s7 + $0x30] sm:$0xff] %vm3568_vm11, %v3895_v20  ;;  %v3666_v15 = vmul.f32 0.6931472, %v4419_v25  ;;  %v4421_v63 = vpop.eup %4420  ;;  %v3686_v28 = vadd.f32 1.0, %v3685_v0 }
 0x1d6   : > { %v6296_v49 = vpop.xlane.xlu0 %2794  ;;  %v3322_v58 = vmul.f32 0.6931472, %v4421_v63  ;;  %4428 = vlog2.f32 %v3338_v47  ;;  %3576 = vst.msk [vmem:[%s6158_s11 + $0x38] sm:$0xff] %vm3568_vm11, %v3543_v11  ;;  %vm6366_vm4 = vcmp.lt.f32.partialorder %v3688_v32, 0.0004427343 }
 0x1d7   : > { %v3672_v9 = vsel %vm6310_vm2, %v3669_v53, %v3666_v15  ;;  %v3347_v3 = vadd.f32 1.0, %v6296_v49  ;;  %v3687_v50 = vmul.f32 %v3686_v28, %v6278_v59  ;;  %v3350_v55 = vmul.f32 -0.5, %v6296_v49 }
 0x1d8   : > { %v6294_v31 = vpop.xlane.xlu1 %3077  ;;  %v3896_v26 = vmul.f32 0.02, %v3672_v9  ;;  %v3328_v2 = vsel %vm3327_vm5, %v3325_v1, %v3322_v58  ;;  %v3343_v59 = vmul.f32 %v3342_v40, %v6280_v13  ;;  %vm6378_vm9 = vcmp.lt.f32.partialorder %v3344_v54, 0.0004427343 }
 0x1d9   : > { %v3691_v43 = vadd.f32 1.0, %v6294_v31  ;;  %v3544_v21 = vmul.f32 0.5, %v3328_v2  ;;  %v3694_v57 = vmul.f32 -0.5, %v6294_v31  ;;  %v3697_v18 = vand.u32 2147483647, %v6294_v31 }
 0x1da   : > { %v4423_v52 = vpop.eup %4422  ;;  %3928 = vst.msk [vmem:[%s6144_s7 + $0x38] sm:$0xff] %vm3568_vm11, %v3896_v26  ;;  %v3353_v53 = vand.u32 2147483647, %v6296_v49  ;;  %v3351_v44 = vadd.f32 1.0, %v3350_v55 }
 0x1db   : > { %4430 = vlog2.f32 %v3691_v43  ;;  %v3675_v35 = vmul.f32 0.6931472, %v4423_v52  ;;  %3577 = vst.msk [vmem:[%s6158_s11 + $0x40] sm:$0xff] %vm3568_vm11, %v3544_v21  ;;  %v4425_v37 = vpop.eup %4424  ;;  %v3695_v10 = vadd.f32 1.0, %v3694_v57  ;;  %vm6394_vm13 = vcmp.lt.f32.partialorder %v3697_v18, 0.0004427343 }
 0x1dc   : > { %v6319_v6 = vpop.xlane.xlu1 %2799  ;;  %4432 = vlog2.f32 %v3347_v3  ;;  %v3331_v7 = vmul.f32 0.6931472, %v4425_v37  ;;  %vm6409_vm15 = vcmp.lt.f32.partialorder %v3353_v53, 0.0004427343  ;;  %v3352_v2 = vmul.f32 %v3351_v44, %v6296_v49 }
 0x1dd   : > { %v6317_v61 = vpop.xlane.xlu0 %3082  ;;  %v3681_v4 = vsel %vm6343_vm12, %v3678_v30, %v3675_v35  ;;  %v3356_v51 = vadd.f32 1.0, %v6319_v6  ;;  %v3696_v15 = vmul.f32 %v3695_v10, %v6294_v31  ;;  %v3359_v56 = vmul.f32 -0.5, %v6319_v6 }
 0x1de   : > { %v3700_v34 = vadd.f32 1.0, %v6317_v61  ;;  %v3897_v62 = vmul.f32 0.02, %v3681_v4  ;;  %v3703_v12 = vmul.f32 -0.5, %v6317_v61  ;;  %v3337_v17 = vsel %vm6349_vm6, %v3334_v33, %v3331_v7 }
 0x1df   : > { %v4427_v48 = vpop.eup %4426  ;;  %v3545_v41 = vmul.f32 0.5, %v3337_v17  ;;  %v3706_v1 = vand.u32 2147483647, %v6317_v61  ;;  %v3362_v29 = vand.u32 2147483647, %v6319_v6  ;;  %v3360_v30 = vadd.f32 1.0, %v3359_v56 }
 0x1e0   : > { %4434 = vlog2.f32 %v3700_v34  ;;  %v3684_v38 = vmul.f32 0.6931472, %v4427_v48  ;;  %3929 = vst.msk [vmem:[%s6144_s7 + $0x40] sm:$0xff] %vm3568_vm11, %v3897_v62  ;;  %v4429_v8 = vpop.eup %4428  ;;  %v3704_v47 = vadd.f32 1.0, %v3703_v12 }
 0x1e1   : > { %v6338_v14 = vpop.xlane.xlu0 %2804  ;;  %v3340_v46 = vmul.f32 0.6931472, %v4429_v8  ;;  %4436 = vlog2.f32 %v3356_v51  ;;  %3578 = vst.msk [vmem:[%s6158_s11 + $0x48] sm:$0xff] %vm3568_vm11, %v3545_v41  ;;  %vm3707_vm1 = vcmp.lt.f32.partialorder %v3706_v1, 0.0004427343 }
 0x1e2   : > { %v3690_v25 = vsel %vm6366_vm4, %v3687_v50, %v3684_v38  ;;  %v3365_v27 = vadd.f32 1.0, %v6338_v14  ;;  %v3705_v21 = vmul.f32 %v3704_v47, %v6317_v61  ;;  %v3368_v19 = vmul.f32 -0.5, %v6338_v14 }
 0x1e3   : > { %v6336_v45 = vpop.xlane.xlu1 %3087  ;;  %v3898_v42 = vmul.f32 0.02, %v3690_v25  ;;  %v3346_v11 = vsel %vm6378_vm9, %v3343_v59, %v3340_v46  ;;  %vm6433_vm3 = vcmp.lt.f32.partialorder %v3362_v29, 0.0004427343  ;;  %v3371_v48 = vand.u32 2147483647, %v6338_v14 }
 0x1e4   : > { %v3709_v13 = vadd.f32 1.0, %v6336_v45  ;;  %v3546_v58 = vmul.f32 0.5, %v3346_v11  ;;  %v3712_v24 = vmul.f32 -0.5, %v6336_v45  ;;  %v3715_v49 = vand.u32 2147483647, %v6336_v45 }
 0x1e5   : > { %v4431_v63 = vpop.eup %4430  ;;  %3930 = vst.msk [vmem:[%s6144_s7 + $0x48] sm:$0xff] %vm3568_vm11, %v3898_v42  ;;  %v3369_v5 = vadd.f32 1.0, %v3368_v19  ;;  %v3361_v38 = vmul.f32 %v3360_v30, %v6319_v6  ;;  %vm6460_vm7 = vcmp.lt.f32.partialorder %v3371_v48, 0.0004427343 }
 0x1e6   : > { %4438 = vlog2.f32 %v3709_v13  ;;  %v3693_v23 = vmul.f32 0.6931472, %v4431_v63  ;;  %v4433_v43 = vpop.eup %4432  ;;  %3579 = vst.msk [vmem:[%s6158_s11 + $0x50] sm:$0xff] %vm3568_vm11, %v3546_v58  ;;  %v3713_v34 = vadd.f32 1.0, %v3712_v24  ;;  %vm6443_vm14 = vcmp.lt.f32.partialorder %v3715_v49, 0.0004427343 }
 0x1e7   : > { %v6360_v36 = vpop.xlane.xlu1 %2809  ;;  %4440 = vlog2.f32 %v3365_v27  ;;  %v3349_v52 = vmul.f32 0.6931472, %v4433_v43  ;;  %v3370_v13 = vmul.f32 %v3369_v5, %v6338_v14 }
 0x1e8   : > { %v6358_v60 = vpop.xlane.xlu0 %3092  ;;  %v3699_v32 = vsel %vm6394_vm13, %v3696_v15, %v3693_v23  ;;  %v3374_v33 = vadd.f32 1.0, %v6360_v36  ;;  %v3714_v39 = vmul.f32 %v3713_v34, %v6336_v45  ;;  %v3377_v41 = vmul.f32 -0.5, %v6360_v36 }
 0x1e9   : > { %v3718_v28 = vadd.f32 1.0, %v6358_v60  ;;  %v3899_v35 = vmul.f32 0.02, %v3699_v32  ;;  %v3355_v40 = vsel %vm6409_vm15, %v3352_v2, %v3349_v52  ;;  %v3721_v61 = vmul.f32 -0.5, %v6358_v60 }
 0x1ea   : > { %v4435_v3 = vpop.eup %4434  ;;  %v3547_v37 = vmul.f32 0.5, %v3355_v40  ;;  %v3724_v6 = vand.u32 2147483647, %v6358_v60  ;;  %v3380_v0 = vand.u32 2147483647, %v6360_v36  ;;  %v3378_v23 = vadd.f32 1.0, %v3377_v41 }
 0x1eb   : > { %4442 = vlog2.f32 %v3718_v28  ;;  %v3702_v54 = vmul.f32 0.6931472, %v4435_v3  ;;  %3931 = vst.msk [vmem:[%s6144_s7 + $0x50] sm:$0xff] %vm3568_vm11, %v3899_v35  ;;  %v4437_v7 = vpop.eup %4436  ;;  %v3722_v51 = vadd.f32 1.0, %v3721_v61 }
 0x1ec   : > { %v6385_v20 = vpop.xlane.xlu0 %2814  ;;  %3580 = vst.msk [vmem:[%s6158_s11 + $0x58] sm:$0xff] %vm3568_vm11, %v3547_v37  ;;  %4444 = vlog2.f32 %v3374_v33  ;;  %v3358_v59 = vmul.f32 0.6931472, %v4437_v7  ;;  %vm6476_vm8 = vcmp.lt.f32.partialorder %v3724_v6, 0.0004427343  ;;  %v3379_v40 = vmul.f32 %v3378_v23, %v6360_v36 }
 0x1ed   : > { %v3708_v50 = vsel %vm3707_vm1, %v3705_v21, %v3702_v54  ;;  %v3383_v25 = vadd.f32 1.0, %v6385_v20  ;;  %v3723_v14 = vmul.f32 %v3722_v51, %v6358_v60  ;;  %v3386_v1 = vmul.f32 -0.5, %v6385_v20 }
 0x1ee   : > { %v3900_v55 = vmul.f32 0.02, %v3708_v50  ;;  %v3364_v53 = vsel %vm6433_vm3, %v3361_v38, %v3358_v59  ;;  %vm6487_vm10 = vcmp.lt.f32.partialorder %v3380_v0, 0.0004427343  ;;  %v3389_v3 = vand.u32 2147483647, %v6385_v20 }
 0x1ef   : > { %v3548_v44 = vmul.f32 0.5, %v3364_v53  ;;  %v3387_v19 = vadd.f32 1.0, %v3386_v1 }
 0x1f0   : > { %v6383_v16 = vpop.xlane.xlu1 %3097  ;;  %v6405_v31 = vpop.xlane.xlu0 %3102  ;;  %3932 = vst.msk [vmem:[%s6144_s7 + $0x58] sm:$0xff] %vm3568_vm11, %v3900_v55  ;;  %vm6516_vm2 = vcmp.lt.f32.partialorder %v3389_v3, 0.0004427343 }
 0x1f1   : > { %v3727_v62 = vadd.f32 1.0, %v6383_v16  ;;  %v4439_v17 = vpop.eup %4438  ;;  %v3730_v45 = vmul.f32 -0.5, %v6383_v16  ;;  %3581 = vst.msk [vmem:[%s6158_s11 + $0x60] sm:$0xff] %vm3568_vm11, %v3548_v44  ;;  %v3733_v26 = vand.u32 2147483647, %v6383_v16  ;;  %v3736_v24 = vadd.f32 1.0, %v6405_v31 }
 0x1f2   : > { %v3711_v8 = vmul.f32 0.6931472, %v4439_v17  ;;  %v4441_v46 = vpop.eup %4440  ;;  %v3739_v52 = vmul.f32 -0.5, %v6405_v31  ;;  %v3742_v33 = vand.u32 2147483647, %v6405_v31  ;;  %v3388_v55 = vmul.f32 %v3387_v19, %v6385_v20 }
 0x1f3   : > { %4446 = vlog2.f32 %v3727_v62  ;;  %v3367_v11 = vmul.f32 0.6931472, %v4441_v46  ;;  %v3731_v2 = vadd.f32 1.0, %v3730_v45  ;;  %vm6500_vm0 = vcmp.lt.f32.partialorder %v3733_v26, 0.0004427343 }
 0x1f4   : > { %v6407_v9 = vpop.xlane.xlu1 %2819  ;;  %v6426_v57 = vpop.xlane.xlu0 %2824  ;;  %v3717_v15 = vsel %vm6443_vm14, %v3714_v39, %v3711_v8  ;;  %4448 = vlog2.f32 %v3383_v25  ;;  %v3740_v36 = vadd.f32 1.0, %v3739_v52  ;;  %vm6530_vm5 = vcmp.lt.f32.partialorder %v3742_v33, 0.0004427343 }
 0x1f5   : > { %v3901_v63 = vmul.f32 0.02, %v3717_v15  ;;  %v4443_v27 = vpop.eup %4442  ;;  %v3373_v60 = vsel %vm6460_vm7, %v3370_v13, %v3367_v11  ;;  %v3392_v29 = vadd.f32 1.0, %v6407_v9  ;;  %4450 = vlog2.f32 %v3736_v24 }
 0x1f6   : > { %v3720_v43 = vmul.f32 0.6931472, %v4443_v27  ;;  %v3549_v28 = vmul.f32 0.5, %v3373_v60  ;;  %v4445_v30 = vpop.eup %4444  ;;  %v3732_v4 = vmul.f32 %v3731_v2, %v6383_v16  ;;  %v3395_v50 = vmul.f32 -0.5, %v6407_v9 }
 0x1f7   : > { %3933 = vst.msk [vmem:[%s6144_s7 + $0x60] sm:$0xff] %vm3568_vm11, %v3901_v63  ;;  %4452 = vlog2.f32 %v3392_v29  ;;  %v3376_v37 = vmul.f32 0.6931472, %v4445_v30  ;;  %v3401_v62 = vadd.f32 1.0, %v6426_v57  ;;  %v3398_v39 = vand.u32 2147483647, %v6407_v9 }
 0x1f8   : > { %v6424_v22 = vpop.xlane.xlu1 %3107  ;;  %v3726_v21 = vsel %vm6476_vm8, %v3723_v14, %v3720_v43  ;;  %3582 = vst.msk [vmem:[%s6158_s11 + $0x68] sm:$0xff] %vm3568_vm11, %v3549_v28  ;;  %v3396_v6 = vadd.f32 1.0, %v3395_v50  ;;  %v3741_v25 = vmul.f32 %v3740_v36, %v6405_v31  ;;  %v3404_v13 = vmul.f32 -0.5, %v6426_v57 }
 0x1f9   : > { %v6447_v18 = vpop.xlane.xlu0 %3112  ;;  %v3902_v49 = vmul.f32 0.02, %v3726_v21  ;;  %v3745_v34 = vadd.f32 1.0, %v6424_v22  ;;  %v3382_v7 = vsel %vm6487_vm10, %v3379_v40, %v3376_v37  ;;  %v3748_v38 = vmul.f32 -0.5, %v6424_v22 }
 0x1fa   : > { %v3550_v17 = vmul.f32 0.5, %v3382_v7  ;;  %v3754_v20 = vadd.f32 1.0, %v6447_v18  ;;  %v3751_v44 = vand.u32 2147483647, %v6424_v22  ;;  %vm6543_vm12 = vcmp.lt.f32.partialorder %v3398_v39, 0.0004427343 }
 0x1fb   : > { %3934 = vst.msk [vmem:[%s6144_s7 + $0x68] sm:$0xff] %vm3568_vm11, %v3902_v49  ;;  %4454 = vlog2.f32 %v3745_v34  ;;  %v3749_v46 = vadd.f32 1.0, %v3748_v38  ;;  %v3757_v11 = vmul.f32 -0.5, %v6447_v18  ;;  %v3397_v27 = vmul.f32 %v3396_v6, %v6407_v9 }
 0x1fc   : > { %v6449_v12 = vpop.xlane.xlu1 %2829  ;;  %4456 = vlog2.f32 %v3401_v62  ;;  %3583 = vst.msk [vmem:[%s6158_s11 + $0x70] sm:$0xff] %vm3568_vm11, %v3550_v17  ;;  %v3407_v58 = vand.u32 2147483647, %v6426_v57  ;;  %v3405_v24 = vadd.f32 1.0, %v3404_v13  ;;  %v3760_v60 = vand.u32 2147483647, %v6447_v18 }
 0x1fd   : > { %v6468_v47 = vpop.xlane.xlu0 %2834  ;;  %v4447_v61 = vpop.eup %4446  ;;  %v3410_v42 = vadd.f32 1.0, %v6449_v12  ;;  %4458 = vlog2.f32 %v3754_v20  ;;  %v3413_v43 = vmul.f32 -0.5, %v6449_v12  ;;  %v3750_v29 = vmul.f32 %v3749_v46, %v6424_v22 }
 0x1fe   : > { %v3729_v48 = vmul.f32 0.6931472, %v4447_v61  ;;  %v4449_v10 = vpop.eup %4448  ;;  %vm6558_vm6 = vcmp.lt.f32.partialorder %v3751_v44, 0.0004427343  ;;  %v3758_v19 = vadd.f32 1.0, %v3757_v11  ;;  %v3419_v40 = vadd.f32 1.0, %v6468_v47 }
 0x1ff   : > { %v3385_v8 = vmul.f32 0.6931472, %v4449_v10  ;;  %v4451_v31 = vpop.eup %4450  ;;  %4460 = vlog2.f32 %v3410_v42  ;;  %vm6567_vm4 = vcmp.lt.f32.partialorder %v3407_v58, 0.0004427343  ;;  %v3406_v61 = vmul.f32 %v3405_v24, %v6426_v57 }
 0x200   : > { %v6472_v56 = vpop.xlane.xlu1 %3117  ;;  %v3735_v59 = vsel %vm6500_vm0, %v3732_v4, %v3729_v48  ;;  %v3738_v1 = vmul.f32 0.6931472, %v4451_v31  ;;  %vm6577_vm9 = vcmp.lt.f32.partialorder %v3760_v60, 0.0004427343  ;;  %v3414_v4 = vadd.f32 1.0, %v3413_v43 }
 0x201   : > { %v3903_v51 = vmul.f32 0.02, %v3735_v59  ;;  %v3391_v45 = vsel %vm6516_vm2, %v3388_v55, %v3385_v8  ;;  %v4453_v14 = vpop.eup %4452  ;;  %v3763_v23 = vadd.f32 1.0, %v6472_v56  ;;  %v3766_v3 = vmul.f32 -0.5, %v6472_v56 }
 0x202   : > { %v3551_v0 = vmul.f32 0.5, %v3391_v45  ;;  %v3394_v26 = vmul.f32 0.6931472, %v4453_v14  ;;  %v3744_v2 = vsel %vm6530_vm5, %v3741_v25, %v3738_v1  ;;  %v3416_v36 = vand.u32 2147483647, %v6449_v12 }
 0x203   : > { %v6495_v35 = vpop.xlane.xlu0 %3122  ;;  %3935 = vst.msk [vmem:[%s6144_s7 + $0x70] sm:$0xff] %vm3568_vm11, %v3903_v51  ;;  %4462 = vlog2.f32 %v3763_v23  ;;  %v3904_v52 = vmul.f32 0.02, %v3744_v2  ;;  %v3759_v57 = vmul.f32 %v3758_v19, %v6447_v18  ;;  %v3767_v7 = vadd.f32 1.0, %v3766_v3 }
 0x204   : > { %v6508_v5 = vpop.xlane.xlu1 %2839  ;;  %3584 = vst.msk [vmem:[%s6158_s11 + $0x78] sm:$0xff] %vm3568_vm11, %v3551_v0  ;;  %v3400_v21 = vsel %vm6543_vm12, %v3397_v27, %v3394_v26  ;;  %v3772_v33 = vadd.f32 1.0, %v6495_v35  ;;  %4464 = vlog2.f32 %v3419_v40  ;;  %v3422_v38 = vmul.f32 -0.5, %v6468_v47 }
 0x205   : > { %v4455_v32 = vpop.eup %4454  ;;  %v3552_v30 = vmul.f32 0.5, %v3400_v21  ;;  %3936 = vst.msk [vmem:[%s6144_s7 + $0x78] sm:$0xff] %vm3568_vm11, %v3904_v52  ;;  %v3775_v10 = vmul.f32 -0.5, %v6495_v35  ;;  %v3428_v17 = vadd.f32 1.0, %v6508_v5  ;;  %v3415_v8 = vmul.f32 %v3414_v4, %v6449_v12 }
 0x206   : > { %v3747_v49 = vmul.f32 0.6931472, %v4455_v32  ;;  %v4457_v34 = vpop.eup %4456  ;;  %4466 = vlog2.f32 %v3772_v33  ;;  %v3769_v6 = vand.u32 2147483647, %v6472_v56  ;;  %vm3417_vm13 = vcmp.lt.f32.partialorder %v3416_v36, 0.0004427343 }
 0x207   : > { %v6525_v41 = vpop.xlane.xlu0 %2844  ;;  %3585 = vst.msk [vmem:[%s6158_s11 + $0x80] sm:$0xff] %vm3568_vm11, %v3552_v30  ;;  %v3403_v48 = vmul.f32 0.6931472, %v4457_v34  ;;  %v4459_v55 = vpop.eup %4458  ;;  %v3425_v25 = vand.u32 2147483647, %v6468_v47  ;;  %4468 = vlog2.f32 %v3428_v17  ;;  %v3768_v42 = vmul.f32 %v3767_v7, %v6472_v56 }
 0x208   : > { %v3753_v50 = vsel %vm6558_vm6, %v3750_v29, %v3747_v49  ;;  %v3756_v18 = vmul.f32 0.6931472, %v4459_v55  ;;  %v3431_v45 = vmul.f32 -0.5, %v6508_v5  ;;  %v3423_v0 = vadd.f32 1.0, %v3422_v38 }
 0x209   : > { %v6541_v15 = vpop.xlane.xlu1 %3127  ;;  %v3905_v62 = vmul.f32 0.02, %v3753_v50  ;;  %v3409_v16 = vsel %vm6567_vm4, %v3406_v61, %v3403_v48  ;;  %v4461_v39 = vpop.eup %4460  ;;  %v3776_v63 = vadd.f32 1.0, %v3775_v10  ;;  %v3778_v1 = vand.u32 2147483647, %v6495_v35 }
 0x20a   : > { %v3553_v51 = vmul.f32 0.5, %v3409_v16  ;;  %v3412_v20 = vmul.f32 0.6931472, %v4461_v39  ;;  %v3762_v13 = vsel %vm6577_vm9, %v3759_v57, %v3756_v18  ;;  %v3781_v12 = vadd.f32 1.0, %v6541_v15 }
 0x20b   : > { %3937 = vst.msk [vmem:[%s6144_s7 + $0x80] sm:$0xff] %vm3568_vm11, %v3905_v62  ;;  %v3906_v44 = vmul.f32 0.02, %v3762_v13  ;;  %vm3770_vm15 = vcmp.lt.f32.partialorder %v3769_v6, 0.0004427343  ;;  %v3437_v27 = vadd.f32 1.0, %v6525_v41  ;;  %v3424_v29 = vmul.f32 %v3423_v0, %v6468_v47 }
 0x20c   : > { %3586 = vst.msk [vmem:[%s6158_s11 + $0x88] sm:$0xff] %vm3568_vm11, %v3553_v51  ;;  %v3418_v31 = vsel %vm3417_vm13, %v3415_v8, %v3412_v20  ;;  %4470 = vlog2.f32 %v3781_v12  ;;  %vm6612_vm1 = vcmp.lt.f32.partialorder %v3425_v25, 0.0004427343  ;;  %v3432_v26 = vadd.f32 1.0, %v3431_v45 }
 0x20d   : > { %v6562_v28 = vpop.xlane.xlu0 %3132  ;;  %v6572_v54 = vpop.xlane.xlu1 %2849  ;;  %v3554_v11 = vmul.f32 0.5, %v3418_v31  ;;  %3938 = vst.msk [vmem:[%s6144_s7 + $0x88] sm:$0xff] %vm3568_vm11, %v3906_v44  ;;  %v3434_v24 = vand.u32 2147483647, %v6508_v5  ;;  %v3784_v9 = vmul.f32 -0.5, %v6541_v15  ;;  %4472 = vlog2.f32 %v3437_v27 }
 0x20e   : > { %v4463_v46 = vpop.eup %4462  ;;  %v3790_v60 = vadd.f32 1.0, %v6562_v28  ;;  %v3777_v19 = vmul.f32 %v3776_v63, %v6495_v35  ;;  %vm6628_vm3 = vcmp.lt.f32.partialorder %v3778_v1, 0.0004427343  ;;  %v3787_v49 = vand.u32 2147483647, %v6541_v15 }
 0x20f   : > { %v3765_v14 = vmul.f32 0.6931472, %v4463_v46  ;;  %3587 = vst.msk [vmem:[%s6158_s11 + $0x90] sm:$0xff] %vm3568_vm11, %v3554_v11  ;;  %v4465_v43 = vpop.eup %4464  ;;  %v3440_v47 = vmul.f32 -0.5, %v6525_v41  ;;  %v3446_v22 = vadd.f32 1.0, %v6572_v54  ;;  %v3433_v35 = vmul.f32 %v3432_v26, %v6508_v5 }
 0x210   : > { %v4467_v52 = vpop.eup %4466  ;;  %v3421_v21 = vmul.f32 0.6931472, %v4465_v43  ;;  %4474 = vlog2.f32 %v3790_v60  ;;  %vm6640_vm14 = vcmp.lt.f32.partialorder %v3434_v24, 0.0004427343  ;;  %v3793_v61 = vmul.f32 -0.5, %v6562_v28 }
 0x211   : > { %v6593_v59 = vpop.xlane.xlu0 %2854  ;;  %v3771_v23 = vsel %vm3770_vm15, %v3768_v42, %v3765_v14  ;;  %v3774_v30 = vmul.f32 0.6931472, %v4467_v52  ;;  %v4469_v37 = vpop.eup %4468  ;;  %v3785_v50 = vadd.f32 1.0, %v3784_v9  ;;  %4476 = vlog2.f32 %v3446_v22 }
 0x212   : > { %v3907_v2 = vmul.f32 0.02, %v3771_v23  ;;  %v3427_v40 = vsel %vm6612_vm1, %v3424_v29, %v3421_v21  ;;  %v3430_v62 = vmul.f32 0.6931472, %v4469_v37  ;;  %v3449_v5 = vmul.f32 -0.5, %v6572_v54 }
 0x213   : > { %v6600_v53 = vpop.xlane.xlu1 %3137  ;;  %v3555_v4 = vmul.f32 0.5, %v3427_v40  ;;  %v3780_v33 = vsel %vm6628_vm3, %v3777_v19, %v3774_v30  ;;  %vm6653_vm7 = vcmp.lt.f32.partialorder %v3787_v49, 0.0004427343  ;;  %v3441_v55 = vadd.f32 1.0, %v3440_v47 }
 0x214   : > { %3939 = vst.msk [vmem:[%s6144_s7 + $0x90] sm:$0xff] %vm3568_vm11, %v3907_v2  ;;  %v3908_v36 = vmul.f32 0.02, %v3780_v33  ;;  %v3799_v57 = vadd.f32 1.0, %v6600_v53  ;;  %v3443_v16 = vand.u32 2147483647, %v6525_v41  ;;  %v3436_v39 = vsel %vm6640_vm14, %v3433_v35, %v3430_v62 }
 0x215   : > { %3588 = vst.msk [vmem:[%s6158_s11 + $0x98] sm:$0xff] %vm3568_vm11, %v3555_v4  ;;  %v3455_v38 = vadd.f32 1.0, %v6593_v59  ;;  %v3794_v51 = vadd.f32 1.0, %v3793_v61  ;;  %v3796_v18 = vand.u32 2147483647, %v6562_v28  ;;  %v3556_v8 = vmul.f32 0.5, %v3436_v39 }
 0x216   : > { %v4471_v17 = vpop.eup %4470  ;;  %3940 = vst.msk [vmem:[%s6144_s7 + $0x98] sm:$0xff] %vm3568_vm11, %v3908_v36  ;;  %4478 = vlog2.f32 %v3799_v57  ;;  %v3786_v20 = vmul.f32 %v3785_v50, %v6541_v15  ;;  %v3802_v25 = vmul.f32 -0.5, %v6600_v53  ;;  %v3450_v13 = vadd.f32 1.0, %v3449_v5 }
 0x217   : > { %v6617_v58 = vpop.xlane.xlu0 %3142  ;;  %v6625_v32 = vpop.xlane.xlu1 %2859  ;;  %v3783_v6 = vmul.f32 0.6931472, %v4471_v17  ;;  %4480 = vlog2.f32 %v3455_v38  ;;  %v3458_v42 = vmul.f32 -0.5, %v6593_v59  ;;  %3589 = vst.msk [vmem:[%s6158_s11 + $0xa0] sm:$0xff] %vm3568_vm11, %v3556_v8  ;;  %v3442_v44 = vmul.f32 %v3441_v55, %v6525_v41 }
 0x218   : > { %v3808_v45 = vadd.f32 1.0, %v6617_v58  ;;  %v4473_v12 = vpop.eup %4472  ;;  %vm6675_vm8 = vcmp.lt.f32.partialorder %v3443_v16, 0.0004427343  ;;  %v3452_v15 = vand.u32 2147483647, %v6572_v54  ;;  %v3795_v1 = vmul.f32 %v3794_v51, %v6562_v28 }
 0x219   : > { %v3789_v46 = vsel %vm6653_vm7, %v3786_v20, %v3783_v6  ;;  %v3439_v14 = vmul.f32 0.6931472, %v4473_v12  ;;  %vm6683_vm10 = vcmp.lt.f32.partialorder %v3796_v18, 0.0004427343  ;;  %v3803_v23 = vadd.f32 1.0, %v3802_v25 }
 0x21a   : > { %v4475_v63 = vpop.eup %4474  ;;  %v3909_v11 = vmul.f32 0.02, %v3789_v46  ;;  %v3805_v41 = vand.u32 2147483647, %v6600_v53  ;;  %4482 = vlog2.f32 %v3808_v45  ;;  %v3451_v60 = vmul.f32 %v3450_v13, %v6572_v54 }
 0x21b   : > { %v6647_v48 = vpop.xlane.xlu0 %2864  ;;  %v3792_v27 = vmul.f32 0.6931472, %v4475_v63  ;;  %v3445_v24 = vsel %vm6675_vm8, %v3442_v44, %v3439_v14  ;;  %v3459_v28 = vadd.f32 1.0, %v3458_v42  ;;  %v3464_v43 = vadd.f32 1.0, %v6625_v32  ;;  %v4477_v2 = vpop.eup %4476 }
 0x21c   : > { %3941 = vst.msk [vmem:[%s6144_s7 + $0xa0] sm:$0xff] %vm3568_vm11, %v3909_v11  ;;  %v3557_v29 = vmul.f32 0.5, %v3445_v24  ;;  %v3461_v52 = vand.u32 2147483647, %v6593_v59  ;;  %v3448_v3 = vmul.f32 0.6931472, %v4477_v2  ;;  %v3804_v54 = vmul.f32 %v3803_v23, %v6600_v53 }
 0x21d   : > { %v6659_v10 = vpop.xlane.xlu1 %3147  ;;  %v3798_v9 = vsel %vm6683_vm10, %v3795_v1, %v3792_v27  ;;  %v3811_v30 = vmul.f32 -0.5, %v6617_v58  ;;  %4484 = vlog2.f32 %v3464_v43  ;;  %vm3453_vm0 = vcmp.lt.f32.partialorder %v3452_v15, 0.0004427343 }
 0x21e   : > { %v3817_v21 = vadd.f32 1.0, %v6659_v10  ;;  %v3910_v19 = vmul.f32 0.02, %v3798_v9  ;;  %3590 = vst.msk [vmem:[%s6158_s11 + $0xa8] sm:$0xff] %vm3568_vm11, %v3557_v29  ;;  %vm6704_vm2 = vcmp.lt.f32.partialorder %v3805_v41, 0.0004427343  ;;  %v3454_v40 = vsel %vm3453_vm0, %v3451_v60, %v3448_v3 }
 0x21f   : > { %v3814_v35 = vand.u32 2147483647, %v6617_v58  ;;  %v3467_v34 = vmul.f32 -0.5, %v6625_v32  ;;  %v3473_v61 = vadd.f32 1.0, %v6647_v48  ;;  %v3558_v37 = vmul.f32 0.5, %v3454_v40 }
 0x220   : > { %4486 = vlog2.f32 %v3817_v21  ;;  %v4479_v22 = vpop.eup %4478  ;;  %3942 = vst.msk [vmem:[%s6144_s7 + $0xa8] sm:$0xff] %vm3568_vm11, %v3910_v19  ;;  %v3460_v4 = vmul.f32 %v3459_v28, %v6593_v59  ;;  %v3820_v33 = vmul.f32 -0.5, %v6659_v10  ;;  %vm6719_vm5 = vcmp.lt.f32.partialorder %v3461_v52, 0.0004427343 }
 0x221   : > { %v6680_v0 = vpop.xlane.xlu0 %3152  ;;  %v6688_v26 = vpop.xlane.xlu1 %2869  ;;  %v3801_v53 = vmul.f32 0.6931472, %v4479_v22  ;;  %v3812_v5 = vadd.f32 1.0, %v3811_v30  ;;  %4488 = vlog2.f32 %v3473_v61  ;;  %3591 = vst.msk [vmem:[%s6158_s11 + $0xb0] sm:$0xff] %vm3568_vm11, %v3558_v37  ;;  %v3470_v55 = vand.u32 2147483647, %v6625_v32 }
 0x222   : > { %v4481_v36 = vpop.eup %4480  ;;  %v3826_v57 = vadd.f32 1.0, %v6680_v0  ;;  %v3476_v16 = vmul.f32 -0.5, %v6647_v48  ;;  %v3468_v17 = vadd.f32 1.0, %v3467_v34  ;;  %v3823_v39 = vand.u32 2147483647, %v6659_v10 }
 0x223   : > { %v3807_v7 = vsel %vm6704_vm2, %v3804_v54, %v3801_v53  ;;  %v3457_v59 = vmul.f32 0.6931472, %v4481_v36  ;;  %vm6733_vm12 = vcmp.lt.f32.partialorder %v3814_v35, 0.0004427343  ;;  %v3821_v6 = vadd.f32 1.0, %v3820_v33 }
 0x224   : > { %v3911_v38 = vmul.f32 0.02, %v3807_v7  ;;  %4490 = vlog2.f32 %v3826_v57  ;;  %v4483_v51 = vpop.eup %4482  ;;  %v3482_v20 = vadd.f32 1.0, %v6688_v26  ;;  %v3813_v45 = vmul.f32 %v3812_v5, %v6617_v58 }
 0x225   : > { %v6708_v47 = vpop.xlane.xlu0 %2874  ;;  %v3463_v18 = vsel %vm6719_vm5, %v3460_v4, %v3457_v59  ;;  %v3810_v42 = vmul.f32 0.6931472, %v4483_v51  ;;  %v3829_v12 = vmul.f32 -0.5, %v6680_v0  ;;  %vm6744_vm6 = vcmp.lt.f32.partialorder %v3470_v55, 0.0004427343 }
 0x226   : > { %3943 = vst.msk [vmem:[%s6144_s7 + $0xb0] sm:$0xff] %vm3568_vm11, %v3911_v38  ;;  %v3559_v13 = vmul.f32 0.5, %v3463_v18  ;;  %v3477_v44 = vadd.f32 1.0, %v3476_v16  ;;  %4492 = vlog2.f32 %v3482_v20  ;;  %v3469_v58 = vmul.f32 %v3468_v17, %v6625_v32 }
 0x227   : > { %v6717_v50 = vpop.xlane.xlu1 %3157  ;;  %v4485_v63 = vpop.eup %4484  ;;  %v3816_v11 = vsel %vm6733_vm12, %v3813_v45, %v3810_v42  ;;  %vm6756_vm4 = vcmp.lt.f32.partialorder %v3823_v39, 0.0004427343  ;;  %v3479_v1 = vand.u32 2147483647, %v6647_v48  ;;  %v3822_v41 = vmul.f32 %v3821_v6, %v6659_v10 }
 0x228   : > { %v3835_v31 = vadd.f32 1.0, %v6717_v50  ;;  %3592 = vst.msk [vmem:[%s6158_s11 + $0xb8] sm:$0xff] %vm3568_vm11, %v3559_v13  ;;  %v3912_v27 = vmul.f32 0.02, %v3816_v11  ;;  %v3466_v23 = vmul.f32 0.6931472, %v4485_v63  ;;  %v3478_v2 = vmul.f32 %v3477_v44, %v6647_v48 }
 0x229   : > { %v3830_v60 = vadd.f32 1.0, %v3829_v12  ;;  %v3485_v28 = vmul.f32 -0.5, %v6688_v26  ;;  %v3491_v43 = vadd.f32 1.0, %v6708_v47  ;;  %v3832_v29 = vand.u32 2147483647, %v6680_v0 }
 0x22a   : > { %v4487_v56 = vpop.eup %4486  ;;  %4494 = vlog2.f32 %v3835_v31  ;;  %3944 = vst.msk [vmem:[%s6144_s7 + $0xb8] sm:$0xff] %vm3568_vm11, %v3912_v27  ;;  %v3472_v32 = vsel %vm6744_vm6, %v3469_v58, %v3466_v23  ;;  %v3488_v9 = vand.u32 2147483647, %v6688_v26  ;;  %v3838_v3 = vmul.f32 -0.5, %v6717_v50 }
 0x22b   : > { %v6738_v25 = vpop.xlane.xlu0 %3162  ;;  %v6749_v15 = vpop.xlane.xlu1 %2879  ;;  %v3819_v24 = vmul.f32 0.6931472, %v4487_v56  ;;  %v3560_v21 = vmul.f32 0.5, %v3472_v32  ;;  %4496 = vlog2.f32 %v3491_v43  ;;  %v3494_v49 = vmul.f32 -0.5, %v6708_v47 }
 0x22c   : > { %v4489_v52 = vpop.eup %4488  ;;  %v3844_v48 = vadd.f32 1.0, %v6738_v25  ;;  %vm3480_vm9 = vcmp.lt.f32.partialorder %v3479_v1, 0.0004427343  ;;  %v3831_v35 = vmul.f32 %v3830_v60, %v6680_v0  ;;  %v3486_v34 = vadd.f32 1.0, %v3485_v28 }
 0x22d   : > { %v3825_v19 = vsel %vm6756_vm4, %v3822_v41, %v3819_v24  ;;  %v3475_v54 = vmul.f32 0.6931472, %v4489_v52  ;;  %3593 = vst.msk [vmem:[%s6158_s11 + $0xc0] sm:$0xff] %vm3568_vm11, %v3560_v21  ;;  %v3500_v61 = vadd.f32 1.0, %v6749_v15  ;;  %v3841_v4 = vand.u32 2147483647, %v6717_v50 }
 0x22e   : > { %v3913_v30 = vmul.f32 0.02, %v3825_v19  ;;  %v4491_v40 = vpop.eup %4490  ;;  %4498 = vlog2.f32 %v3844_v48  ;;  %vm3833_vm13 = vcmp.lt.f32.partialorder %v3832_v29, 0.0004427343  ;;  %v3839_v36 = vadd.f32 1.0, %v3838_v3 }
 0x22f   : > { %v6771_v10 = vpop.xlane.xlu0 %2884  ;;  %v6778_v22 = vpop.xlane.xlu1 %3167  ;;  %v3481_v37 = vsel %vm3480_vm9, %v3478_v2, %v3475_v54  ;;  %v3828_v53 = vmul.f32 0.6931472, %v4491_v40  ;;  %4500 = vlog2.f32 %v3500_v61  ;;  %vm6787_vm15 = vcmp.lt.f32.partialorder %v3488_v9, 0.0004427343 }
 0x230   : > { %3945 = vst.msk [vmem:[%s6144_s7 + $0xc0] sm:$0xff] %vm3568_vm11, %v3913_v30  ;;  %v3561_v33 = vmul.f32 0.5, %v3481_v37  ;;  %v4493_v62 = vpop.eup %4492  ;;  %v3495_v57 = vadd.f32 1.0, %v3494_v49  ;;  %v3853_v7 = vadd.f32 1.0, %v6778_v22  ;;  %v3487_v38 = vmul.f32 %v3486_v34, %v6688_v26 }
 0x231   : > { %v3834_v5 = vsel %vm3833_vm13, %v3831_v35, %v3828_v53  ;;  %v3484_v16 = vmul.f32 0.6931472, %v4493_v62  ;;  %v3847_v17 = vmul.f32 -0.5, %v6738_v25  ;;  %vm6798_vm1 = vcmp.lt.f32.partialorder %v3841_v4, 0.0004427343 }
 0x232   : > { %3594 = vst.msk [vmem:[%s6158_s11 + $0xc8] sm:$0xff] %vm3568_vm11, %v3561_v33  ;;  %v3914_v55 = vmul.f32 0.02, %v3834_v5  ;;  %v3497_v18 = vand.u32 2147483647, %v6708_v47  ;;  %v3503_v8 = vmul.f32 -0.5, %v6749_v15  ;;  %4502 = vlog2.f32 %v3853_v7 }
 0x233   : > { %v6792_v59 = vpop.xlane.xlu0 %3172  ;;  %v3490_v26 = vsel %vm6787_vm15, %v3487_v38, %v3484_v16  ;;  %v3840_v13 = vmul.f32 %v3839_v36, %v6717_v50  ;;  %v3509_v42 = vadd.f32 1.0, %v6771_v10  ;;  %v3496_v12 = vmul.f32 %v3495_v57, %v6708_v47 }
 0x234   : > { %v4495_v39 = vpop.eup %4494  ;;  %3946 = vst.msk [vmem:[%s6144_s7 + $0xc8] sm:$0xff] %vm3568_vm11, %v3914_v55  ;;  %v3562_v45 = vmul.f32 0.5, %v3490_v26  ;;  %v3850_v46 = vand.u32 2147483647, %v6738_v25  ;;  %v3856_v44 = vmul.f32 -0.5, %v6778_v22  ;;  %v3848_v11 = vadd.f32 1.0, %v3847_v17 }
 0x235   : > { %v6804_v6 = vpop.xlane.xlu1 %2889  ;;  %v3837_v20 = vmul.f32 0.6931472, %v4495_v39  ;;  %v4497_v31 = vpop.eup %4496  ;;  %v3506_v58 = vand.u32 2147483647, %v6749_v15  ;;  %4504 = vlog2.f32 %v3509_v42  ;;  %v3504_v1 = vadd.f32 1.0, %v3503_v8 }
 0x236   : > { %3595 = vst.msk [vmem:[%s6158_s11 + $0xd0] sm:$0xff] %vm3568_vm11, %v3562_v45  ;;  %v3493_v14 = vmul.f32 0.6931472, %v4497_v31  ;;  %v3862_v47 = vadd.f32 1.0, %v6792_v59  ;;  %vm3498_vm3 = vcmp.lt.f32.partialorder %v3497_v18, 0.0004427343  ;;  %v3849_v9 = vmul.f32 %v3848_v11, %v6738_v25 }
 0x237   : > { %v3843_v63 = vsel %vm6798_vm1, %v3840_v13, %v3837_v20  ;;  %v3512_v27 = vmul.f32 -0.5, %v6771_v10  ;;  %v3518_v23 = vadd.f32 1.0, %v6804_v6  ;;  %vm6827_vm14 = vcmp.lt.f32.partialorder %v3850_v46, 0.0004427343 }
 0x238   : > { %v3915_v50 = vmul.f32 0.02, %v3843_v63  ;;  %v4499_v41 = vpop.eup %4498  ;;  %v3499_v24 = vsel %vm3498_vm3, %v3496_v12, %v3493_v14  ;;  %v3857_v28 = vadd.f32 1.0, %v3856_v44  ;;  %4506 = vlog2.f32 %v3862_v47 }
 0x239   : > { %v6821_v56 = vpop.xlane.xlu0 %2894  ;;  %v6831_v43 = vpop.xlane.xlu1 %3177  ;;  %v3563_v2 = vmul.f32 0.5, %v3499_v24  ;;  %v3846_v29 = vmul.f32 0.6931472, %v4499_v41  ;;  %vm6834_vm7 = vcmp.lt.f32.partialorder %v3506_v58, 0.0004427343  ;;  %v3505_v19 = vmul.f32 %v3504_v1, %v6749_v15 }
 0x23a   : > { %3947 = vst.msk [vmem:[%s6144_s7 + $0xd0] sm:$0xff] %vm3568_vm11, %v3915_v50  ;;  %v4501_v32 = vpop.eup %4500  ;;  %v3859_v3 = vand.u32 2147483647, %v6778_v22  ;;  %4508 = vlog2.f32 %v3518_v23  ;;  %v3513_v54 = vadd.f32 1.0, %v3512_v27  ;;  %v3865_v49 = vmul.f32 -0.5, %v6792_v59 }
 0x23b   : > { %v3502_v21 = vmul.f32 0.6931472, %v4501_v32  ;;  %3596 = vst.msk [vmem:[%s6158_s11 + $0xd8] sm:$0xff] %vm3568_vm11, %v3563_v2  ;;  %v3852_v30 = vsel %vm6827_vm14, %v3849_v9, %v3846_v29  ;;  %v3871_v25 = vadd.f32 1.0, %v6831_v43  ;;  %v3858_v35 = vmul.f32 %v3857_v28, %v6778_v22 }
 0x23c   : > { %v4503_v48 = vpop.eup %4502  ;;  %v3916_v40 = vmul.f32 0.02, %v3852_v30  ;;  %v3515_v34 = vand.u32 2147483647, %v6771_v10  ;;  %v3521_v4 = vmul.f32 -0.5, %v6804_v6  ;;  %v3527_v36 = vadd.f32 1.0, %v6821_v56 }
 0x23d   : > { %v3508_v15 = vsel %vm6834_vm7, %v3505_v19, %v3502_v21  ;;  %v6850_v61 = vpop.xlane.xlu0 %3182  ;;  %v3855_v53 = vmul.f32 0.6931472, %v4503_v48  ;;  %4510 = vlog2.f32 %v3871_v25  ;;  %vm3860_vm8 = vcmp.lt.f32.partialorder %v3859_v3, 0.0004427343 }
 0x23e   : > { %v3564_v37 = vmul.f32 0.5, %v3508_v15  ;;  %3948 = vst.msk [vmem:[%s6144_s7 + $0xd8] sm:$0xff] %vm3568_vm11, %v3916_v40  ;;  %v3868_v33 = vand.u32 2147483647, %v6792_v59  ;;  %v3514_v5 = vmul.f32 %v3513_v54, %v6771_v10  ;;  %v3866_v0 = vadd.f32 1.0, %v3865_v49 }
 0x23f   : > { %v4505_v62 = vpop.eup %4504  ;;  %v3861_v22 = vsel %vm3860_vm8, %v3858_v35, %v3855_v53  ;;  %v3880_v57 = vadd.f32 1.0, %v6850_v61  ;;  %v3874_v16 = vmul.f32 -0.5, %v6831_v43  ;;  %4512 = vlog2.f32 %v3527_v36 }
 0x240   : > { %3597 = vst.msk [vmem:[%s6158_s11 + $0xe0] sm:$0xff] %vm3568_vm11, %v3564_v37  ;;  %v3917_v7 = vmul.f32 0.02, %v3861_v22  ;;  %v3511_v55 = vmul.f32 0.6931472, %v4505_v62  ;;  %v3522_v38 = vadd.f32 1.0, %v3521_v4  ;;  %v3867_v8 = vmul.f32 %v3866_v0, %v6792_v59 }
 0x241   : > { %vm3516_vm10 = vcmp.lt.f32.partialorder %v3515_v34, 0.0004427343  ;;  %4514 = vlog2.f32 %v3880_v57  ;;  %v3524_v51 = vand.u32 2147483647, %v6804_v6  ;;  %v3530_v26 = vmul.f32 -0.5, %v6821_v56 }
 0x242   : > { %v4507_v17 = vpop.eup %4506  ;;  %3949 = vst.msk [vmem:[%s6144_s7 + $0xe0] sm:$0xff] %vm3568_vm11, %v3917_v7  ;;  %v3517_v39 = vsel %vm3516_vm10, %v3514_v5, %v3511_v55  ;;  %vm3869_vm0 = vcmp.lt.f32.partialorder %v3868_v33, 0.0004427343  ;;  %v3875_v13 = vadd.f32 1.0, %v3874_v16  ;;  %v3883_v42 = vmul.f32 -0.5, %v6850_v61 }
 0x243   : > { %v3565_v18 = vmul.f32 0.5, %v3517_v39  ;;  %v3864_v10 = vmul.f32 0.6931472, %v4507_v17  ;;  %v3523_v46 = vmul.f32 %v3522_v38, %v6804_v6  ;;  %v3877_v44 = vand.u32 2147483647, %v6831_v43 }
 0x244   : > { %v4509_v20 = vpop.eup %4508  ;;  %vm3525_vm2 = vcmp.lt.f32.partialorder %v3524_v51, 0.0004427343  ;;  %v3531_v11 = vadd.f32 1.0, %v3530_v26  ;;  %v3533_v58 = vand.u32 2147483647, %v6821_v56  ;;  %v3876_v1 = vmul.f32 %v3875_v13, %v6831_v43 }
 0x245   : > { %3598 = vst.msk [vmem:[%s6158_s11 + $0xe8] sm:$0xff] %vm3568_vm11, %v3565_v18  ;;  %v3870_v45 = vsel %vm3869_vm0, %v3867_v8, %v3864_v10  ;;  %v3520_v12 = vmul.f32 0.6931472, %v4509_v20  ;;  %v3884_v47 = vadd.f32 1.0, %v3883_v42  ;;  %vm3878_vm5 = vcmp.lt.f32.partialorder %v3877_v44, 0.0004427343 }
 0x246   : > { %v3918_v31 = vmul.f32 0.02, %v3870_v45  ;;  %v3886_v6 = vand.u32 2147483647, %v6850_v61  ;;  %v3532_v28 = vmul.f32 %v3531_v11, %v6821_v56  ;;  %vm3534_vm12 = vcmp.lt.f32.partialorder %v3533_v58, 0.0004427343 }
 0x247   : > { %v4511_v59 = vpop.eup %4510  ;;  %v3526_v63 = vsel %vm3525_vm2, %v3523_v46, %v3520_v12  ;;  %v3885_v2 = vmul.f32 %v3884_v47, %v6850_v61 }
 0x248   : > { %3950 = vst.msk [vmem:[%s6144_s7 + $0xe8] sm:$0xff] %vm3568_vm11, %v3918_v31  ;;  %v3566_v50 = vmul.f32 0.5, %v3526_v63  ;;  %v3873_v14 = vmul.f32 0.6931472, %v4511_v59  ;;  %vm3887_vm6 = vcmp.lt.f32.partialorder %v3886_v6, 0.0004427343 }
 0x249   : > { %v4513_v27 = vpop.eup %4512 }
 0x24a   : > { %3599 = vst.msk [vmem:[%s6158_s11 + $0xf0] sm:$0xff] %vm3568_vm11, %v3566_v50  ;;  %v3879_v23 = vsel %vm3878_vm5, %v3876_v1, %v3873_v14  ;;  %v3529_v60 = vmul.f32 0.6931472, %v4513_v27 }
 0x24b   : > { %v4515_v41 = vpop.eup %4514  ;;  %v3919_v24 = vmul.f32 0.02, %v3879_v23 }
 0x24c   : > { %v3882_v32 = vmul.f32 0.6931472, %v4515_v41  ;;  %v3535_v43 = vsel %vm3534_vm12, %v3532_v28, %v3529_v60 }
 0x24d   : > { %3951 = vst.msk [vmem:[%s6144_s7 + $0xf0] sm:$0xff] %vm3568_vm11, %v3919_v24  ;;  %v3567_v29 = vmul.f32 0.5, %v3535_v43 }
 0x24e   : > { %v3888_v9 = vsel %vm3887_vm6, %v3885_v2, %v3882_v32 }
 0x24f   : > { %v3920_v52 = vmul.f32 0.02, %v3888_v9  ;;  %3600 = vst.msk [vmem:[%s6158_s11 + $0xf8] sm:$0xff] %vm3568_vm11, %v3567_v29 }
 0x251   : > { %3952 = vst.msk [vmem:[%s6144_s7 + $0xf8] sm:$0xff] %vm3568_vm11, %v3920_v52 }
 0x252 PF: > { %s16_s18 = sadd.s32 1, %s4522_s18  }
 0x253   : > { %p13_p4 = scmp.ge.s32.totalorder %s16_s18, 4  }
 0x255   :  { %15 = sbr.rel (!%p13_p4) target bundleno = 1 (0x1), region = 81 }

</bundles_post_ra>
